<compile_context>
chip_gen: v6e
topology: v6e:2x2x1
jax: 0.10.0
libtpu: 0.0.40
codegen_flags: <defaults>
</compile_context>

<pallas_src>
import functools

import jax
import jax.numpy as jnp
from jax.experimental import pallas as pl
from jax.experimental.pallas import tpu as pltpu

EPS = 1e-5  # torch default eps for the gLN layers


def conv1d_block_kernel(
    x_ref,               # (1, C_in, T) f32
    w1_ref, b1_ref,      # conv1x1: (C_out, C_in) bf16 (scale1 folded), (C_out, 1) f32
    g1_ref, bt1_ref,     # gLN1 gamma/beta: (C_out, 1)
    dw_ref, dwb_ref,     # depthwise weight (C_out, K), bias (C_out, 1)
    g2_ref, bt2_ref,     # gLN2 gamma/beta: (C_out, 1)
    wout_ref, bout_ref,  # fused [sconv*scale2 ; skip]: (2*C_in, C_out) bf16, (2*C_in, 1) f32
    alphas_ref,          # SMEM (2,) f32: [prelu1_alpha, prelu2_alpha]
    out_ref, skip_ref,   # (1, C_in, T) each
    *, kernel_size, dilation, padding):
    x = x_ref[0]                       # (C_in, T) f32
    C_in, T = x.shape
    C_out = w1_ref.shape[0]
    alpha1 = alphas_ref[0]
    alpha2 = alphas_ref[1]
    inv_ct = 1.0 / float(C_out * T)

    # ---- conv1x1 (pointwise) on the MXU: bf16 operands, f32 accumulate.
    #      scale1 is already folded into w1/b1.
    w = jnp.dot(w1_ref[...], x.astype(jnp.bfloat16),
                preferred_element_type=jnp.float32) + b1_ref[...]

    # ---- PReLU 1 ----
    w = jnp.where(w >= 0, w, alpha1 * w)

    # ---- gLN 1: single fused reduction sweep, rsqrt folded into affine ----
    s1 = jnp.sum(w)
    s2 = jnp.sum(w * w)
    mean = s1 * inv_ct
    var = s2 * inv_ct - mean * mean
    inv = jax.lax.rsqrt(var + EPS)           # scalar -> EUP, off the VALU path
    scale = g1_ref[...] * inv                # (C_out, 1)
    w = w * scale + (bt1_ref[...] - scale * mean)

    # ---- depthwise conv (groups == channels), 'same' length.
    #      No padded copy: each tap is an XLU lane-roll masked at the edges.
    lane = jax.lax.broadcasted_iota(jnp.int32, (C_out, T), 1)

    def tap(src, k):
        s = k * dilation - padding           # static per-tap time offset
        if s == 0:
            return src
        r = (-s) % T
        t = pltpu.roll(src, shift=r, axis=1) if r != 0 else src
        valid = jnp.logical_and(lane + s >= 0, lane + s < T)
        return jnp.where(valid, t, 0.0)

    acc = dwb_ref[...] + dw_ref[:, 0:1] * tap(w, 0)
    for k in range(1, kernel_size):          # static tap loop
        acc = acc + dw_ref[:, k:k + 1] * tap(w, k)
    w = acc

    # ---- PReLU 2 + gLN 2 (same fused form) ----
    w = jnp.where(w >= 0, w, alpha2 * w)
    s1 = jnp.sum(w)
    s2 = jnp.sum(w * w)
    mean = s1 * inv_ct
    var = s2 * inv_ct - mean * mean
    inv = jax.lax.rsqrt(var + EPS)
    scale = g2_ref[...] * inv
    w = w * scale + (bt2_ref[...] - scale * mean)

    # ---- residual (sconv, scale2 folded) + skip as ONE fused MXU matmul ----
    y = jnp.dot(wout_ref[...], w.astype(jnp.bfloat16),
                preferred_element_type=jnp.float32) + bout_ref[...]
    out_ref[0] = (x + y[:C_in]).astype(out_ref.dtype)
    skip_ref[0] = y[C_in:].astype(skip_ref.dtype)


def prepare_params(p):
    """One-time parameter preprocessing (NOT per call): fold scale1 into the
    conv1x1, fold scale2 into sconv, fuse sconv/skip weights, cast MXU
    operands to bf16, and pack the two PReLU alphas for SMEM."""
    scale1 = p["scalars"][0, 0]
    alpha1 = p["scalars"][0, 1]
    alpha2 = p["scalars"][0, 2]
    scale2 = p["scalars"][0, 3]
    return {
        "w1": (p["w1"] * scale1).astype(jnp.bfloat16),
        "b1": p["b1"] * scale1,
        "g1": p["g1"], "bt1": p["bt1"],
        "dw": p["dw"], "dwb": p["dwb"],
        "g2": p["g2"], "bt2": p["bt2"],
        "wout": jnp.concatenate([p["ws"] * scale2, p["wsk"]],
                                axis=0).astype(jnp.bfloat16),
        "bout": jnp.concatenate([p["bs"] * scale2, p["bsk"]], axis=0),
        "alphas": jnp.stack([alpha1, alpha2]).astype(jnp.float32),
    }


def conv1d_block(x, pp, *, kernel_size, dilation):
    """x: (N, C_in, T) float32, pp: prepare_params(...) output.
    Returns (out, skip), each (N, C_in, T)."""
    N, C_in, T = x.shape
    C_out = pp["w1"].shape[0]
    # gLN/fLN branch of the module uses floor(dilation*(K-1)/2); odd products
    # would make 'same' padding impossible with a static slice (same limit as
    # the reference), so assert it here.
    assert (dilation * (kernel_size - 1)) % 2 == 0, \
        "gLN/fLN 'same' padding needs dilation*(kernel_size-1) to be even"
    padding = dilation * (kernel_size - 1) // 2

    kern = functools.partial(conv1d_block_kernel,
                             kernel_size=kernel_size,
                             dilation=dilation,
                             padding=padding)

    def full(shape):
        # whole-array block, replicated across the batch grid
        return pl.BlockSpec(shape, lambda n, _nd=len(shape): (0,) * _nd)

    act_spec = pl.BlockSpec((1, C_in, T), lambda n: (n, 0, 0))
    smem_spec = pl.BlockSpec(memory_space=pltpu.MemorySpace.SMEM)

    # VMEM budget: a handful of (C_out, T) f32 intermediates + double-buffered
    # (1, C_in, T) activations/outputs + tiny weights.  Whole-T per batch.
    # TODO(synk): for production Conv-TasNet shapes (C_out~512, T~4000) on
    # v7x (64 MiB VMEM), tile the time axis with a two-pass gLN-stats
    # structure (per-tile sum/sum-sq accumulation, then normalize+dwconv+matmul).
    vmem_est = (4 * (8 * C_out * T + 6 * C_in * T)
                + 2 * (C_out * C_in + 2 * C_in * C_out)
                + 4 * (C_out * (kernel_size + 6) + 4 * C_in))
    vmem_limit = int(min(max(2 * vmem_est, 32 << 20), 64 << 20))

    return pl.pallas_call(
        kern,
        out_shape=(jax.ShapeDtypeStruct((N, C_in, T), x.dtype),
                   jax.ShapeDtypeStruct((N, C_in, T), x.dtype)),
        grid=(N,),
        in_specs=[
            act_spec,                        # x
            full((C_out, C_in)),             # conv1x1 weight (bf16, scale1 folded)
            full((C_out, 1)),                # conv1x1 bias
            full((C_out, 1)),                # gLN1 gamma
            full((C_out, 1)),                # gLN1 beta
            full((C_out, kernel_size)),      # depthwise weight
            full((C_out, 1)),                # depthwise bias
            full((C_out, 1)),                # gLN2 gamma
            full((C_out, 1)),                # gLN2 beta
            full((2 * C_in, C_out)),         # fused [sconv*scale2; skip] weight (bf16)
            full((2 * C_in, 1)),             # fused bias
            smem_spec,                       # PReLU alphas in SMEM
        ],
        out_specs=(act_spec, act_spec),
        compiler_params=pltpu.CompilerParams(
            dimension_semantics=("parallel",),
            vmem_limit_bytes=vmem_limit),
    )(x, pp["w1"], pp["b1"], pp["g1"], pp["bt1"], pp["dw"], pp["dwb"],
      pp["g2"], pp["bt2"], pp["wout"], pp["bout"], pp["alphas"])


def ref_forward(x, p, *, kernel_size, dilation):
    """Pure-JAX reference mirroring the PyTorch forward (gLN norm_type).
    Matmul operands are quantized to bf16 exactly like the kernel's MXU path
    so the comparison tolerance can stay tight."""
    sc = p["scalars"]
    scale1, alpha1, alpha2, scale2 = sc[0, 0], sc[0, 1], sc[0, 2], sc[0, 3]
    T = x.shape[2]
    pad = dilation * (kernel_size - 1) // 2

    def mm(wgt, act):  # bf16 operands, f32 accumulation
        return jnp.einsum("oc,nct->not", wgt.astype(jnp.bfloat16),
                          act.astype(jnp.bfloat16),
                          preferred_element_type=jnp.float32)

    w = mm(p["w1"] * scale1, x) + p["b1"][None] * scale1
    w = jnp.where(w >= 0, w, alpha1 * w)
    mean = jnp.mean(w, axis=(1, 2), keepdims=True)
    var = jnp.mean((w - mean) ** 2, axis=(1, 2), keepdims=True)
    w = p["g1"][None] * (w - mean) / jnp.sqrt(var + EPS) + p["bt1"][None]

    wp = jnp.pad(w, ((0, 0), (0, 0), (pad, pad)))
    acc = jnp.broadcast_to(p["dwb"][None], w.shape)
    for k in range(kernel_size):
        s = k * dilation
        acc = acc + p["dw"][None, :, k:k + 1] * wp[:, :, s:s + T]
    w = acc

    w = jnp.where(w >= 0, w, alpha2 * w)
    mean2 = jnp.mean(w, axis=(1, 2), keepdims=True)
    var2 = jnp.mean((w - mean2) ** 2, axis=(1, 2), keepdims=True)
    w = p["g2"][None] * (w - mean2) / jnp.sqrt(var2 + EPS) + p["bt2"][None]

    skip = mm(p["wsk"], w) + p["bsk"][None]
    out = x + (mm(p["ws"] * scale2, w) + p["bs"][None] * scale2)
    return out, skip


def make_params(key, c_in, c_out, kernel_size, layer):
    ks = jax.random.split(key, 8)
    f32 = jnp.float32
    scale1 = 1.0
    scale2 = 0.9 ** layer
    prelu_a = 0.25  # torch PReLU default init, single shared parameter
    return {
        "w1":  (0.1 * jax.random.normal(ks[0], (c_out, c_in))).astype(f32),
        "b1":  (0.1 * jax.random.normal(ks[1], (c_out, 1))).astype(f32),
        "g1":  jnp.ones((c_out, 1), f32),     # gLN gamma init
        "bt1": jnp.zeros((c_out, 1), f32),    # gLN beta init
        "dw":  (0.1 * jax.random.normal(ks[2], (c_out, kernel_size))).astype(f32),
        "dwb": (0.1 * jax.random.normal(ks[3], (c_out, 1))).astype(f32),
        "g2":  jnp.ones((c_out, 1), f32),
        "bt2": jnp.zeros((c_out, 1), f32),
        "ws":  (0.1 * jax.random.normal(ks[4], (c_in, c_out))).astype(f32),
        "bs":  (0.1 * jax.random.normal(ks[5], (c_in, 1))).astype(f32),
        "wsk": (0.1 * jax.random.normal(ks[6], (c_in, c_out))).astype(f32),
        "bsk": (0.1 * jax.random.normal(ks[7], (c_in, 1))).astype(f32),
        "scalars": jnp.array([[scale1, prelu_a, prelu_a, scale2]], f32),
    }


if __name__ == "__main__":
    # Small but lane/sublane-dense shapes: T multiple of 128, C multiples of 8.
    N, C_IN, C_OUT, T = 2, 16, 64, 128
    K, DIL, LAYER = 3, 2, 1

    key = jax.random.PRNGKey(0)
    kx, kp = jax.random.split(key)
    x = jax.random.normal(kx, (N, C_IN, T), dtype=jnp.float32)
    params = make_params(kp, C_IN, C_OUT, K, LAYER)
    prepped = prepare_params(params)   # one-time weight folding / fusing / bf16 cast

    out, skip = conv1d_block(x, prepped, kernel_size=K, dilation=DIL)
    out = jax.block_until_ready(out)
    skip = jax.block_until_ready(skip)

    out_ref, skip_ref = ref_forward(x, params, kernel_size=K, dilation=DIL)
    assert out.shape == (N, C_IN, T) and skip.shape == (N, C_IN, T)
    assert jnp.allclose(out, out_ref, rtol=5e-3, atol=5e-3), "out mismatch"
    assert jnp.allclose(skip, skip_ref, rtol=5e-3, atol=5e-3), "skip mismatch"

    print("KERNEL_OK")
</pallas_src>

<mosaic_0001>
module attributes {stable_mosaic.version = 11 : i64} {
  func.func @conv1d_block_kernel(%arg0: i32, %arg1: memref<1x16x128xf32, #tpu.memory_space<vmem>>, %arg2: memref<64x16xbf16, #tpu.memory_space<vmem>>, %arg3: memref<64x1xf32, #tpu.memory_space<vmem>>, %arg4: memref<64x1xf32, #tpu.memory_space<vmem>>, %arg5: memref<64x1xf32, #tpu.memory_space<vmem>>, %arg6: memref<64x3xf32, #tpu.memory_space<vmem>>, %arg7: memref<64x1xf32, #tpu.memory_space<vmem>>, %arg8: memref<64x1xf32, #tpu.memory_space<vmem>>, %arg9: memref<64x1xf32, #tpu.memory_space<vmem>>, %arg10: memref<32x64xbf16, #tpu.memory_space<vmem>>, %arg11: memref<32x1xf32, #tpu.memory_space<vmem>>, %arg12: memref<2xf32, #tpu.memory_space<smem>>, %arg13: memref<1x16x128xf32, #tpu.memory_space<vmem>>, %arg14: memref<1x16x128xf32, #tpu.memory_space<vmem>>) attributes {dimension_semantics = [#tpu.dimension_semantics<parallel>], iteration_bounds = array<i64: 2>, scalar_prefetch = 0 : i64, scratch_operands = 0 : i64, tpu.core_type = #tpu.core_type<tc>, window_params = [{transform_indices = @transform_0, window_bounds = array<i64: 1, 16, 128>}, {pipeline_mode = #tpu.pipeline_mode<synchronous>, transform_indices = @transform_1, window_bounds = array<i64: 64, 16>}, {pipeline_mode = #tpu.pipeline_mode<synchronous>, transform_indices = @transform_2, window_bounds = array<i64: 64, 1>}, {pipeline_mode = #tpu.pipeline_mode<synchronous>, transform_indices = @transform_3, window_bounds = array<i64: 64, 1>}, {pipeline_mode = #tpu.pipeline_mode<synchronous>, transform_indices = @transform_4, window_bounds = array<i64: 64, 1>}, {pipeline_mode = #tpu.pipeline_mode<synchronous>, transform_indices = @transform_5, window_bounds = array<i64: 64, 3>}, {pipeline_mode = #tpu.pipeline_mode<synchronous>, transform_indices = @transform_6, window_bounds = array<i64: 64, 1>}, {pipeline_mode = #tpu.pipeline_mode<synchronous>, transform_indices = @transform_7, window_bounds = array<i64: 64, 1>}, {pipeline_mode = #tpu.pipeline_mode<synchronous>, transform_indices = @transform_8, window_bounds = array<i64: 64, 1>}, {pipeline_mode = #tpu.pipeline_mode<synchronous>, transform_indices = @transform_9, window_bounds = array<i64: 32, 64>}, {pipeline_mode = #tpu.pipeline_mode<synchronous>, transform_indices = @transform_10, window_bounds = array<i64: 32, 1>}, {transform_indices = @transform_11, window_bounds = array<i64: 2>}, {transform_indices = @transform_12, window_bounds = array<i64: 1, 16, 128>}, {transform_indices = @transform_13, window_bounds = array<i64: 1, 16, 128>}]} {
    %c0 = arith.constant 0 : index
    %c0_0 = arith.constant 0 : index
    %c0_1 = arith.constant 0 : index
    %0 = vector.load %arg1[%c0, %c0_0, %c0_1] : memref<1x16x128xf32, #tpu.memory_space<vmem>>, vector<1x16x128xf32>
    %1 = vector.shape_cast %0 : vector<1x16x128xf32> to vector<16x128xf32>
    %c0_2 = arith.constant 0 : index
    %2 = memref.load %arg12[%c0_2] : memref<2xf32, #tpu.memory_space<smem>>
    %c1 = arith.constant 1 : index
    %3 = memref.load %arg12[%c1] : memref<2xf32, #tpu.memory_space<smem>>
    %c0_3 = arith.constant 0 : index
    %c0_4 = arith.constant 0 : index
    %4 = vector.load %arg2[%c0_3, %c0_4] : memref<64x16xbf16, #tpu.memory_space<vmem>>, vector<64x16xbf16>
    %5 = arith.truncf %1 : vector<16x128xf32> to vector<16x128xbf16>
    %cst = arith.constant dense<0.000000e+00> : vector<64x128xf32>
    %6 = tpu.matmul %4, %5, %cst {dimension_numbers = #tpu.dot_dimension_numbers<[1], [0], [0], [1], [0, 0, 1, 1], [], []>} : vector<64x16xbf16>, vector<16x128xbf16>, vector<64x128xf32> -> vector<64x128xf32>
    %c0_5 = arith.constant 0 : index
    %c0_6 = arith.constant 0 : index
    %7 = vector.load %arg3[%c0_5, %c0_6] : memref<64x1xf32, #tpu.memory_space<vmem>>, vector<64x1xf32>
    %8 = vector.broadcast %7 : vector<64x1xf32> to vector<64x128xf32>
    %9 = arith.addf %6, %8 : vector<64x128xf32>
    %cst_7 = arith.constant 0.000000e+00 : f32
    %10 = vector.broadcast %cst_7 : f32 to vector<64x128xf32>
    %11 = arith.cmpf oge, %9, %10 : vector<64x128xf32>
    %12 = vector.broadcast %2 : f32 to vector<64x128xf32>
    %13 = arith.mulf %12, %9 : vector<64x128xf32>
    %14 = arith.select %11, %9, %13 : vector<64x128xi1>, vector<64x128xf32>
    %15 = vector.shape_cast %14 : vector<64x128xf32> to vector<1x64x128xf32>
    %cst_8 = arith.constant dense<0.000000e+00> : vector<1xf32>
    %16 = vector.multi_reduction <add>, %15, %cst_8 [1, 2] : vector<1x64x128xf32> to vector<1xf32>
    %17 = vector.shape_cast %16 : vector<1xf32> to vector<1x1x1xf32>
    %18 = vector.extract %17[0, 0, 0] : f32 from vector<1x1x1xf32>
    %19 = arith.mulf %14, %14 : vector<64x128xf32>
    %20 = vector.shape_cast %19 : vector<64x128xf32> to vector<1x64x128xf32>
    %cst_9 = arith.constant dense<0.000000e+00> : vector<1xf32>
    %21 = vector.multi_reduction <add>, %20, %cst_9 [1, 2] : vector<1x64x128xf32> to vector<1xf32>
    %22 = vector.shape_cast %21 : vector<1xf32> to vector<1x1x1xf32>
    %23 = vector.extract %22[0, 0, 0] : f32 from vector<1x1x1xf32>
    %cst_10 = arith.constant 1.22070313E-4 : f32
    %24 = arith.mulf %18, %cst_10 : f32
    %cst_11 = arith.constant 1.22070313E-4 : f32
    %25 = arith.mulf %23, %cst_11 : f32
    %26 = arith.mulf %24, %24 : f32
    %27 = arith.subf %25, %26 : f32
    %cst_12 = arith.constant 9.99999974E-6 : f32
    %28 = arith.addf %27, %cst_12 : f32
    %29 = math.rsqrt %28 : f32
    %c0_13 = arith.constant 0 : index
    %c0_14 = arith.constant 0 : index
    %30 = vector.load %arg4[%c0_13, %c0_14] : memref<64x1xf32, #tpu.memory_space<vmem>>, vector<64x1xf32>
    %31 = vector.broadcast %29 : f32 to vector<64x1xf32>
    %32 = arith.mulf %30, %31 : vector<64x1xf32>
    %33 = vector.broadcast %32 : vector<64x1xf32> to vector<64x128xf32>
    %34 = arith.mulf %14, %33 : vector<64x128xf32>
    %c0_15 = arith.constant 0 : index
    %c0_16 = arith.constant 0 : index
    %35 = vector.load %arg5[%c0_15, %c0_16] : memref<64x1xf32, #tpu.memory_space<vmem>>, vector<64x1xf32>
    %36 = vector.broadcast %24 : f32 to vector<64x1xf32>
    %37 = arith.mulf %32, %36 : vector<64x1xf32>
    %38 = arith.subf %35, %37 : vector<64x1xf32>
    %39 = vector.broadcast %38 : vector<64x1xf32> to vector<64x128xf32>
    %40 = arith.addf %34, %39 : vector<64x128xf32>
    %41 = tpu.iota {dimensions = array<i32: 1>} : vector<64x128xi32>
    %c0_17 = arith.constant 0 : index
    %c0_18 = arith.constant 0 : index
    %42 = vector.load %arg7[%c0_17, %c0_18] : memref<64x1xf32, #tpu.memory_space<vmem>>, vector<64x1xf32>
    %c0_19 = arith.constant 0 : index
    %c0_20 = arith.constant 0 : index
    %43 = vector.load %arg6[%c0_19, %c0_20] : memref<64x3xf32, #tpu.memory_space<vmem>>, vector<64x1xf32>
    %c2_i32 = arith.constant 2 : i32
    %44 = tpu.dynamic_rotate %40 by %c2_i32 dim 1 : vector<64x128xf32>, i32 -> vector<64x128xf32>
    %c-2_i32 = arith.constant -2 : i32
    %45 = vector.broadcast %c-2_i32 : i32 to vector<64x128xi32>
    %46 = arith.addi %41, %45 : vector<64x128xi32>
    %c0_i32 = arith.constant 0 : i32
    %47 = vector.broadcast %c0_i32 : i32 to vector<64x128xi32>
    %48 = arith.cmpi sge, %46, %47 : vector<64x128xi32>
    %c-2_i32_21 = arith.constant -2 : i32
    %49 = vector.broadcast %c-2_i32_21 : i32 to vector<64x128xi32>
    %50 = arith.addi %41, %49 : vector<64x128xi32>
    %c128_i32 = arith.constant 128 : i32
    %51 = vector.broadcast %c128_i32 : i32 to vector<64x128xi32>
    %52 = arith.cmpi slt, %50, %51 : vector<64x128xi32>
    %53 = arith.andi %48, %52 : vector<64x128xi1>
    %cst_22 = arith.constant 0.000000e+00 : f32
    %54 = vector.broadcast %cst_22 : f32 to vector<64x128xf32>
    %55 = arith.select %53, %44, %54 : vector<64x128xi1>, vector<64x128xf32>
    %56 = vector.broadcast %43 : vector<64x1xf32> to vector<64x128xf32>
    %57 = arith.mulf %56, %55 : vector<64x128xf32>
    %58 = vector.broadcast %42 : vector<64x1xf32> to vector<64x128xf32>
    %59 = arith.addf %58, %57 : vector<64x128xf32>
    %c0_23 = arith.constant 0 : index
    %c1_24 = arith.constant 1 : index
    %60 = vector.load %arg6[%c0_23, %c1_24] : memref<64x3xf32, #tpu.memory_space<vmem>>, vector<64x1xf32>
    %61 = vector.broadcast %60 : vector<64x1xf32> to vector<64x128xf32>
    %62 = arith.mulf %61, %40 : vector<64x128xf32>
    %63 = arith.addf %59, %62 : vector<64x128xf32>
    %c0_25 = arith.constant 0 : index
    %c2 = arith.constant 2 : index
    %64 = vector.load %arg6[%c0_25, %c2] : memref<64x3xf32, #tpu.memory_space<vmem>>, vector<64x1xf32>
    %c126_i32 = arith.constant 126 : i32
    %65 = tpu.dynamic_rotate %40 by %c126_i32 dim 1 : vector<64x128xf32>, i32 -> vector<64x128xf32>
    %c2_i32_26 = arith.constant 2 : i32
    %66 = vector.broadcast %c2_i32_26 : i32 to vector<64x128xi32>
    %67 = arith.addi %41, %66 : vector<64x128xi32>
    %c0_i32_27 = arith.constant 0 : i32
    %68 = vector.broadcast %c0_i32_27 : i32 to vector<64x128xi32>
    %69 = arith.cmpi sge, %67, %68 : vector<64x128xi32>
    %c2_i32_28 = arith.constant 2 : i32
    %70 = vector.broadcast %c2_i32_28 : i32 to vector<64x128xi32>
    %71 = arith.addi %41, %70 : vector<64x128xi32>
    %c128_i32_29 = arith.constant 128 : i32
    %72 = vector.broadcast %c128_i32_29 : i32 to vector<64x128xi32>
    %73 = arith.cmpi slt, %71, %72 : vector<64x128xi32>
    %74 = arith.andi %69, %73 : vector<64x128xi1>
    %cst_30 = arith.constant 0.000000e+00 : f32
    %75 = vector.broadcast %cst_30 : f32 to vector<64x128xf32>
    %76 = arith.select %74, %65, %75 : vector<64x128xi1>, vector<64x128xf32>
    %77 = vector.broadcast %64 : vector<64x1xf32> to vector<64x128xf32>
    %78 = arith.mulf %77, %76 : vector<64x128xf32>
    %79 = arith.addf %63, %78 : vector<64x128xf32>
    %cst_31 = arith.constant 0.000000e+00 : f32
    %80 = vector.broadcast %cst_31 : f32 to vector<64x128xf32>
    %81 = arith.cmpf oge, %79, %80 : vector<64x128xf32>
    %82 = vector.broadcast %3 : f32 to vector<64x128xf32>
    %83 = arith.mulf %82, %79 : vector<64x128xf32>
    %84 = arith.select %81, %79, %83 : vector<64x128xi1>, vector<64x128xf32>
    %85 = vector.shape_cast %84 : vector<64x128xf32> to vector<1x64x128xf32>
    %cst_32 = arith.constant dense<0.000000e+00> : vector<1xf32>
    %86 = vector.multi_reduction <add>, %85, %cst_32 [1, 2] : vector<1x64x128xf32> to vector<1xf32>
    %87 = vector.shape_cast %86 : vector<1xf32> to vector<1x1x1xf32>
    %88 = vector.extract %87[0, 0, 0] : f32 from vector<1x1x1xf32>
    %89 = arith.mulf %84, %84 : vector<64x128xf32>
    %90 = vector.shape_cast %89 : vector<64x128xf32> to vector<1x64x128xf32>
    %cst_33 = arith.constant dense<0.000000e+00> : vector<1xf32>
    %91 = vector.multi_reduction <add>, %90, %cst_33 [1, 2] : vector<1x64x128xf32> to vector<1xf32>
    %92 = vector.shape_cast %91 : vector<1xf32> to vector<1x1x1xf32>
    %93 = vector.extract %92[0, 0, 0] : f32 from vector<1x1x1xf32>
    %cst_34 = arith.constant 1.22070313E-4 : f32
    %94 = arith.mulf %88, %cst_34 : f32
    %cst_35 = arith.constant 1.22070313E-4 : f32
    %95 = arith.mulf %93, %cst_35 : f32
    %96 = arith.mulf %94, %94 : f32
    %97 = arith.subf %95, %96 : f32
    %cst_36 = arith.constant 9.99999974E-6 : f32
    %98 = arith.addf %97, %cst_36 : f32
    %99 = math.rsqrt %98 : f32
    %c0_37 = arith.constant 0 : index
    %c0_38 = arith.constant 0 : index
    %100 = vector.load %arg8[%c0_37, %c0_38] : memref<64x1xf32, #tpu.memory_space<vmem>>, vector<64x1xf32>
    %101 = vector.broadcast %99 : f32 to vector<64x1xf32>
    %102 = arith.mulf %100, %101 : vector<64x1xf32>
    %103 = vector.broadcast %102 : vector<64x1xf32> to vector<64x128xf32>
    %104 = arith.mulf %84, %103 : vector<64x128xf32>
    %c0_39 = arith.constant 0 : index
    %c0_40 = arith.constant 0 : index
    %105 = vector.load %arg9[%c0_39, %c0_40] : memref<64x1xf32, #tpu.memory_space<vmem>>, vector<64x1xf32>
    %106 = vector.broadcast %94 : f32 to vector<64x1xf32>
    %107 = arith.mulf %102, %106 : vector<64x1xf32>
    %108 = arith.subf %105, %107 : vector<64x1xf32>
    %109 = vector.broadcast %108 : vector<64x1xf32> to vector<64x128xf32>
    %110 = arith.addf %104, %109 : vector<64x128xf32>
    %c0_41 = arith.constant 0 : index
    %c0_42 = arith.constant 0 : index
    %111 = vector.load %arg10[%c0_41, %c0_42] : memref<32x64xbf16, #tpu.memory_space<vmem>>, vector<32x64xbf16>
    %112 = arith.truncf %110 : vector<64x128xf32> to vector<64x128xbf16>
    %cst_43 = arith.constant dense<0.000000e+00> : vector<32x128xf32>
    %113 = tpu.matmul %111, %112, %cst_43 {dimension_numbers = #tpu.dot_dimension_numbers<[1], [0], [0], [1], [0, 0, 1, 1], [], []>} : vector<32x64xbf16>, vector<64x128xbf16>, vector<32x128xf32> -> vector<32x128xf32>
    %c0_44 = arith.constant 0 : index
    %c0_45 = arith.constant 0 : index
    %114 = vector.load %arg11[%c0_44, %c0_45] : memref<32x1xf32, #tpu.memory_space<vmem>>, vector<32x1xf32>
    %115 = vector.broadcast %114 : vector<32x1xf32> to vector<32x128xf32>
    %116 = arith.addf %113, %115 : vector<32x128xf32>
    %117 = vector.extract_strided_slice %116 {offsets = [0, 0], sizes = [16, 128], strides = [1, 1]} : vector<32x128xf32> to vector<16x128xf32>
    %118 = arith.addf %1, %117 : vector<16x128xf32>
    %c0_46 = arith.constant 0 : index
    %c0_47 = arith.constant 0 : index
    %c0_48 = arith.constant 0 : index
    %119 = vector.load %arg13[%c0_46, %c0_47, %c0_48] : memref<1x16x128xf32, #tpu.memory_space<vmem>>, vector<1x16x128xf32>
    %120 = vector.shape_cast %119 : vector<1x16x128xf32> to vector<16x128xf32>
    %121 = vector.shape_cast %118 : vector<16x128xf32> to vector<1x16x128xf32>
    tpu.vector_store %arg13[%c0_46, %c0_47, %c0_48], %121 {strides = array<i32>} : memref<1x16x128xf32, #tpu.memory_space<vmem>>, vector<1x16x128xf32>,
    %122 = vector.extract_strided_slice %116 {offsets = [16, 0], sizes = [16, 128], strides = [1, 1]} : vector<32x128xf32> to vector<16x128xf32>
    %c0_49 = arith.constant 0 : index
    %c0_50 = arith.constant 0 : index
    %c0_51 = arith.constant 0 : index
    %123 = vector.load %arg14[%c0_49, %c0_50, %c0_51] : memref<1x16x128xf32, #tpu.memory_space<vmem>>, vector<1x16x128xf32>
    %124 = vector.shape_cast %123 : vector<1x16x128xf32> to vector<16x128xf32>
    %125 = vector.shape_cast %122 : vector<16x128xf32> to vector<1x16x128xf32>
    tpu.vector_store %arg14[%c0_49, %c0_50, %c0_51], %125 {strides = array<i32>} : memref<1x16x128xf32, #tpu.memory_space<vmem>>, vector<1x16x128xf32>,
    return
  }
  func.func @transform_0(%arg0: i32) -> (i32, i32, i32) {
    %c0_i32 = arith.constant 0 : i32
    %c0_i32_0 = arith.constant 0 : i32
    %c0_i32_1 = arith.constant 0 : i32
    return %arg0, %c0_i32, %c0_i32_0 : i32, i32, i32
  }
  func.func @transform_1(%arg0: i32) -> (i32, i32) {
    %c0_i32 = arith.constant 0 : i32
    %c0_i32_0 = arith.constant 0 : i32
    %c0_i32_1 = arith.constant 0 : i32
    return %c0_i32, %c0_i32_0 : i32, i32
  }
  func.func @transform_2(%arg0: i32) -> (i32, i32) {
    %c0_i32 = arith.constant 0 : i32
    %c0_i32_0 = arith.constant 0 : i32
    %c0_i32_1 = arith.constant 0 : i32
    return %c0_i32, %c0_i32_0 : i32, i32
  }
  func.func @transform_3(%arg0: i32) -> (i32, i32) {
    %c0_i32 = arith.constant 0 : i32
    %c0_i32_0 = arith.constant 0 : i32
    %c0_i32_1 = arith.constant 0 : i32
    return %c0_i32, %c0_i32_0 : i32, i32
  }
  func.func @transform_4(%arg0: i32) -> (i32, i32) {
    %c0_i32 = arith.constant 0 : i32
    %c0_i32_0 = arith.constant 0 : i32
    %c0_i32_1 = arith.constant 0 : i32
    return %c0_i32, %c0_i32_0 : i32, i32
  }
  func.func @transform_5(%arg0: i32) -> (i32, i32) {
    %c0_i32 = arith.constant 0 : i32
    %c0_i32_0 = arith.constant 0 : i32
    %c0_i32_1 = arith.constant 0 : i32
    return %c0_i32, %c0_i32_0 : i32, i32
  }
  func.func @transform_6(%arg0: i32) -> (i32, i32) {
    %c0_i32 = arith.constant 0 : i32
    %c0_i32_0 = arith.constant 0 : i32
    %c0_i32_1 = arith.constant 0 : i32
    return %c0_i32, %c0_i32_0 : i32, i32
  }
  func.func @transform_7(%arg0: i32) -> (i32, i32) {
    %c0_i32 = arith.constant 0 : i32
    %c0_i32_0 = arith.constant 0 : i32
    %c0_i32_1 = arith.constant 0 : i32
    return %c0_i32, %c0_i32_0 : i32, i32
  }
  func.func @transform_8(%arg0: i32) -> (i32, i32) {
    %c0_i32 = arith.constant 0 : i32
    %c0_i32_0 = arith.constant 0 : i32
    %c0_i32_1 = arith.constant 0 : i32
    return %c0_i32, %c0_i32_0 : i32, i32
  }
  func.func @transform_9(%arg0: i32) -> (i32, i32) {
    %c0_i32 = arith.constant 0 : i32
    %c0_i32_0 = arith.constant 0 : i32
    %c0_i32_1 = arith.constant 0 : i32
    return %c0_i32, %c0_i32_0 : i32, i32
  }
  func.func @transform_10(%arg0: i32) -> (i32, i32) {
    %c0_i32 = arith.constant 0 : i32
    %c0_i32_0 = arith.constant 0 : i32
    %c0_i32_1 = arith.constant 0 : i32
    return %c0_i32, %c0_i32_0 : i32, i32
  }
  func.func @transform_11(%arg0: i32) -> i32 {
    %c0_i32 = arith.constant 0 : i32
    %c0_i32_0 = arith.constant 0 : i32
    return %c0_i32 : i32
  }
  func.func @transform_12(%arg0: i32) -> (i32, i32, i32) {
    %c0_i32 = arith.constant 0 : i32
    %c0_i32_0 = arith.constant 0 : i32
    %c0_i32_1 = arith.constant 0 : i32
    return %arg0, %c0_i32, %c0_i32_0 : i32, i32, i32
  }
  func.func @transform_13(%arg0: i32) -> (i32, i32, i32) {
    %c0_i32 = arith.constant 0 : i32
    %c0_i32_0 = arith.constant 0 : i32
    %c0_i32_1 = arith.constant 0 : i32
    return %arg0, %c0_i32, %c0_i32_0 : i32, i32, i32
  }
}

</mosaic_0001>

<bundles_post_ra>
// kernel: tpu_custom_call.1
= control target key start
LH: loop header
LB: loop body
LE: loop exit
PB: predicated region body
PF: predicated region fallthrough
CT: control target
= control target key end

     0   :  { %s2623_s0 = inlined_call_operand.vmem [shape: f32[2,16,128], index: 0, kind: input, shape index: {}]   ;;  %s2624_s1 = inlined_call_operand.vmem [shape: bf16[64,16], index: 1, kind: input, shape index: {}]   ;;  %s2625_s2 = inlined_call_operand.vmem [shape: f32[64,1], index: 2, kind: input, shape index: {}]   ;;  %s2626_s3 = inlined_call_operand.vmem [shape: f32[64,1], index: 3, kind: input, shape index: {}]   ;;  %s2627_s4 = inlined_call_operand.vmem [shape: f32[64,1], index: 4, kind: input, shape index: {}]   ;;  %s2628_s5 = inlined_call_operand.vmem [shape: f32[64,3], index: 5, kind: input, shape index: {}]   ;;  %s2629_s6 = inlined_call_operand.vmem [shape: f32[64,1], index: 6, kind: input, shape index: {}]   ;;  %s2630_s7 = inlined_call_operand.vmem [shape: f32[64,1], index: 7, kind: input, shape index: {}]   ;;  %s2631_s8 = inlined_call_operand.vmem [shape: f32[64,1], index: 8, kind: input, shape index: {}]   ;;  %s2632_s9 = inlined_call_operand.vmem [shape: bf16[32,64], index: 9, kind: input, shape index: {}]   ;;  %s2633_s10 = inlined_call_operand.vmem [shape: f32[32,1], index: 10, kind: input, shape index: {}]   ;;  %s2634_s11 = inlined_call_operand.vmem [shape: f32[2], index: 11, kind: input, shape index: {}]   ;;  %s2635_s12 = inlined_call_operand.hbm [shape: f32[2,16,128], index: 12, kind: output, shape index: {0}]   ;;  %s2636_s13 = inlined_call_operand.hbm [shape: f32[2,16,128], index: 13, kind: output, shape index: {1}]  }
   0x1   :  { %2638 = sst [smem:[#allocation12_spill]] %s2623_s0 }
   0x2   :  { %2639 = sst [smem:[#allocation13_spill]] %s2624_s1 }
   0x3   :  { %2640 = sst [smem:[#allocation14_spill]] %s2625_s2 }
   0x4   :  { %2641 = sst [smem:[#allocation15_spill]] %s2626_s3 }
   0x5   :  { %2642 = sst [smem:[#allocation16_spill]] %s2627_s4 }
   0x6   :  { %2643 = sst [smem:[#allocation17_spill]] %s2634_s11 }
   0x7   :  { %19 = vsyncpa [#allocation4], 0 }
   0x8   :  { %20 = vsyncpa [#allocation3], 0 }
   0x9   :  { %22 = vsyncpa [#allocation3 + $0x1], 0 }
   0xa   :  { %23 = vsyncpa [#allocation7], 0 }
   0xb   :  { %25 = vsyncpa [#allocation7 + $0x1], 0  ;;  %s1925_s25 = smov 0   ;;  %s1927_s26 = smov 0  }
   0xc   :  { %s1929_s27 = smov 0   ;;  %s1931_s28 = smov 0  }
   0xd LB: > { %s1946_s29 = sadd.s32 4294967295, %s1843_s28   ;;  %s1557_s30 = sadd.s32 4294967294, %s1843_s28   ;;  %s1843_s28 = sphi %s1931_s28, %s2661_s28   ;;  %s1839_s27 = sphi %s1929_s27, %s2660_s27   ;;  %s1835_s26 = sphi %s1927_s26, %s2659_s26   ;;  %s1831_s25 = sphi %s1925_s25, %s2658_s25  }
   0xe   : > { %s1950_s14 = sadd.s32 1, %s1843_s28   ;;  %s295_s15 = sadd.s32 1, %s1839_s27 }
   0xf   : > { %s292_s16 = ssub.s32 %s1843_s28, %s1950_s14  ;;  %p305_p0 = scmp.ne.s32.totalorder %s1839_s27, %s1835_s26 }
  0x10   : > { %p293_p1 = scmp.eq.s32.totalorder %s292_s16, 0  ;;  %p306_p2 = scmp.eq.s32.totalorder %s1946_s29, 1 }
  0x11   : > { %p311_p3 = scmp.ne.s32.totalorder %s1835_s26, %s1831_s25  ;;  %p312_p4 = scmp.eq.s32.totalorder %s1557_s30, 1 }
  0x12   : > { %s1961_s17 = scalar_select %p293_p1, %s1839_s27, %s295_s15  }
  0x13   : > { %p1963_p5 = por %p306_p2, %p305_p0  ;;  %p1967_p6 = por %p312_p4, %p311_p3 }
  0x14   : > { %2644 = sst [smem:[#allocation11_spill]] %s1961_s17  ;;  %p1558_p7 = scmp.ge.s32.totalorder %s1843_s28, 1 }
  0x15   : > { %p345_p8 = scmp.lt.s32.totalorder %s1843_s28, 3  ;;  %p1655_p9 = scmp.eq.s32.totalorder %s1946_s29, 0 }
  0x16   : > { %s2648_s11 = sld [smem:[#allocation17_spill]] }
  0x17   : > { %p1974_p10 = pnand %p1558_p7, %p345_p8 }
  0x19   : > { %p1644_p11 = pneg %p1974_p10 }
  0x1b   : > { %p1645_p12 = pnand %p1655_p9, %p1644_p11 }
  0x1c   : > { %s388_s23 = sshll.u32 %s2648_s11, 4  ;;  %s389_s23 = int_to_ptr.vmem [resolvable:$true] %s388_s23 }
  0x1d   : > { %s1734_s24 = scalar_lea.vmem %s389_s23, 16  ;;  %p1736_p0 = pneg %p1645_p12 }
  0x1e   : > { %p1735_p13 = scmp.ne.s32.totalorder %s389_s23, %s1734_s24  ;;  %p1742_p3 = scmp.lt.s32.totalorder %s389_s23, %s389_s23 }
  0x1f   : > { %p1743_p4 = scmp.lt.s32.totalorder %s1734_s24, %s1734_s24 }
  0x20   : > { %p1737_p1 = pnand %p1736_p0, %p1735_p13 }
  0x21   : > { %p1744_p7 = por %p1743_p4, %p1742_p3 }
  0x22   : > { %p1738_p2 = pneg %p1737_p1 }
  0x24   : > { %p1745_p8 = pnand %p1744_p7, %p1738_p2 }
  0x26   : > { %1748 = shalt.err (!%p1745_p8)
}
  0x27   : > { %s1845_s30 = smov [#allocation2]   ;;  %409 = sbr.rel (%p1974_p10) target bundleno = 1552 (0x610), region = 68 }
  0x28   : > { %1647 = dma.vmem_to_smem (!%p1645_p12), %s389_s23, 16, %s1845_s30, [#allocation4]  }
  0x2c   : > { %1818 = dma.done.wait (%p1655_p9), [#allocation4], 16  }
  0x2d   : > { %1820 = vsyncadd (%p1655_p9), [#allocation4], 4294967280 }
  0x2e   : > { %415 = sfence }
  0x2f   : > { %p459_p11 = scmp.lt.s32.totalorder %s1946_s29, 1  ;;  %s2649_s1 = sld [smem:[#allocation13_spill]]  ;;  %vm546_vm0 = vcmask 130048   ;;  %v1846_v1 = vmov 0  }
  0x30   : > { %1698 = vset.pattern.permute.xlu0 %v1846_v1  ;;  %s2650_s2 = sld [smem:[#allocation14_spill]]  ;;  %1699 = vset.pattern.permute.xlu1 %v1846_v1 }
  0x31   : > { %s460_s21 = scalar_select %p459_p11, %s1946_s29, 1 }
  0x32   : > { %s2651_s0 = sld [smem:[#allocation12_spill]] }
  0x33   : > { %s1588_s20 = sshll.u32 %s460_s21, 4  ;;  %s2652_s3 = sld [smem:[#allocation15_spill]] }
  0x34   : > { %s2653_s4 = sld [smem:[#allocation16_spill]] }
  0x35   : > { %v1722_v0 = vld [vmem:[%s2649_s1] sm:$0xff]   ;;  %v1723_v9 = vld [vmem:[%s2649_s1 + $0x8] sm:$0xff]   ;;  %v1724_v10 = vld [vmem:[%s2649_s1 + $0x10] sm:$0xff]   ;;  %s1567_s24 = sld [smem:[#allocation2 + $0x1]] }
  0x36   : > { %1604 = vmatprep.mubr.msk.bf16.mxu0 %vm546_vm0, %v1722_v0  ;;  %v478_v2 = vld [vmem:[%s2650_s2] sm:$0xff]  ;;  %v480_v3 = vld [vmem:[%s2650_s2 + $0x10] sm:$0xff]  ;;  %v479_v6 = vld [vmem:[%s2650_s2 + $0x8] sm:$0xff] }
  0x37   : > { %488 = vperm.xlu0 %1698, %v478_v2   ;;  %498 = vperm.xlu1 %1699, %v480_v3   ;;  %v481_v8 = vld [vmem:[%s2650_s2 + $0x18] sm:$0xff]  ;;  %v482_v11 = vld [vmem:[%s2650_s2 + $0x20] sm:$0xff]  ;;  %v483_v12 = vld [vmem:[%s2650_s2 + $0x28] sm:$0xff] }
  0x38   : > { %s2008_s11 = scalar_lea.vmem %s2651_s0, %s1588_s20  ;;  %v484_v13 = vld [vmem:[%s2650_s2 + $0x30] sm:$0xff]  ;;  %v485_v14 = vld [vmem:[%s2650_s2 + $0x38] sm:$0xff]  ;;  %s467_s0 = sld [smem:[#allocation2]] }
  0x39   : > { %v465_v4 = vld [vmem:[%s2008_s11] sm:$0xff]  ;;  %v466_v5 = vld [vmem:[%s2008_s11 + $0x8] sm:$0xff]  ;;  %v1725_v15 = vld [vmem:[%s2649_s1 + $0x18] sm:$0xff]  }
  0x3a   : > { %v477_v7 = vpack.c.bf16 %v466_v5, %v465_v4 }
  0x3b   : > { %493 = vperm.xlu0 %1698, %v479_v6   ;;  %503 = vperm.xlu1 %1699, %v481_v8  }
  0x3c   : > { %1602 = vmatprep.subr.bf16.mxu0 %v477_v7 }
  0x3d   : > { %1603 = vmatpush3.bf16.msra.mxu0 %v477_v7 }
  0x3e   : > { %v632_v25 = vstv %s467_s0 }
  0x3f   : > { %508 = vperm.xlu0 %1698, %v482_v11   ;;  %513 = vperm.xlu1 %1699, %v483_v12  }
  0x40   : > { %1605 = vmatmul.mubr.msk.bf16.vlgmr.msra.gmra.mxu0 %vm546_vm0, %v1723_v9 }
  0x41   : > { %1608 = vmatprep.mubr.msk.bf16.mxu0 %vm546_vm0, %v1724_v10 }
  0x43   : > { %518 = vperm.xlu0 %1698, %v484_v13   ;;  %523 = vperm.xlu1 %1699, %v485_v14  }
  0x48   : > { %1609 = vmatmul.mubr.msk.bf16.gmra.mxu0 %vm546_vm0, %v1725_v15 }
  0xb2   : > { %v489_v16 = vpop.permute.xlu0 %488  ;;  %v499_v17 = vpop.permute.xlu1 %498 }
  0xb6   : > { %v494_v18 = vpop.permute.xlu0 %493  ;;  %v504_v19 = vpop.permute.xlu1 %503 }
  0xba   : > { %v509_v24 = vpop.permute.xlu0 %508  ;;  %v514_v29 = vpop.permute.xlu1 %513 }
  0xbe   : > { %v519_v37 = vpop.permute.xlu0 %518  ;;  %v524_v44 = vpop.permute.xlu1 %523 }
 0x100   : > { %v1606_v20 = vpop.f32.mrf.mxu0 }
 0x101   : > { %v602_v22 = vadd.f32 %v1606_v20, %v499_v17  ;;  %v2091_v17 = vld [vmem:[%s2628_s5] sm:$0xff]  ;;  %v838_v20 = vld [vmem:[%s2629_s6 + $0x8] sm:$0xff] }
 0x102   : > { %v593_v21 = vpop.f32.mrf.mxu0 }
 0x103   : > { %v594_v23 = vadd.f32 %v593_v21, %v489_v16  ;;  %v635_v31 = vmul.f32 %v632_v25, %v602_v22  ;;  %vm626_vm2 = vcmp.ge.f32.partialorder %v602_v22, 0.0  ;;  %v2085_v16 = vld [vmem:[%s2628_s5 + $0x8] sm:$0xff]  ;;  %v2109_v21 = vld [vmem:[%s2628_s5 + $0x18] sm:$0xff] }
 0x104   : > { %v1607_v26 = vpop.f32.mrf.mxu0 }
 0x105   : > { %v633_v27 = vmul.f32 %v632_v25, %v594_v23  ;;  %v605_v28 = vadd.f32 %v1607_v26, %v504_v19  ;;  %vm624_vm1 = vcmp.ge.f32.partialorder %v594_v23, 0.0  ;;  %v2044_v39 = vsel %vm626_vm2, %v602_v22, %v635_v31  ;;  %v2100_v19 = vld [vmem:[%s2628_s5 + $0x10] sm:$0xff]  ;;  %v2115_v22 = vld [vmem:[%s2628_s5 + $0x20] sm:$0xff]  ;;  %v840_v26 = vld [vmem:[%s2629_s6 + $0x18] sm:$0xff] }
 0x106   : > { %v596_v30 = vpop.f32.mrf.mxu0  ;;  %v667_v51 = vmul.f32 %v2044_v39, %v2044_v39 }
 0x107   : > { %v597_v32 = vadd.f32 %v596_v30, %v494_v18  ;;  %v2042_v34 = vsel %vm624_vm1, %v594_v23, %v633_v27  ;;  %v636_v35 = vmul.f32 %v632_v25, %v605_v28  ;;  %vm627_vm4 = vcmp.ge.f32.partialorder %v605_v28, 0.0  ;;  %v837_v18 = vld [vmem:[%s2629_s6] sm:$0xff] }
 0x108   : > { %v1610_v33 = vpop.f32.mrf.mxu0  ;;  %v665_v43 = vmul.f32 %v2042_v34, %v2042_v34  ;;  %v1847_v23 = vmov 1  }
 0x109   : > { %vm625_vm3 = vcmp.ge.f32.partialorder %v597_v32, 0.0  ;;  %v634_v36 = vmul.f32 %v632_v25, %v597_v32  ;;  %v618_v41 = vadd.f32 %v1610_v33, %v519_v37  ;;  %v2054_v48 = vsel %vm627_vm4, %v605_v28, %v636_v35 }
 0x10a   : > { %v609_v38 = vpop.f32.mrf.mxu0  ;;  %v668_v58 = vmul.f32 %v2054_v48, %v2054_v48 }
 0x10b   : > { %v2046_v40 = vsel %vm625_vm3, %v597_v32, %v634_v36  ;;  %v610_v42 = vadd.f32 %v609_v38, %v509_v24  ;;  %v639_v55 = vmul.f32 %v632_v25, %v618_v41  ;;  %vm630_vm6 = vcmp.ge.f32.partialorder %v618_v41, 0.0  ;;  %v839_v24 = vld [vmem:[%s2629_s6 + $0x10] sm:$0xff] }
 0x10c   : > { %v649_v45 = vadd.f32 %v2046_v40, %v2042_v34  ;;  %v666_v46 = vmul.f32 %v2046_v40, %v2046_v40  ;;  %v1611_v47 = vpop.f32.mrf.mxu0  ;;  %vm1354_vm3 = vcmask 523264  }
 0x10d   : > { %vm628_vm5 = vcmp.ge.f32.partialorder %v610_v42, 0.0  ;;  %v637_v49 = vmul.f32 %v632_v25, %v610_v42  ;;  %v621_v50 = vadd.f32 %v1611_v47, %v524_v44  ;;  %v2067_v3 = vsel %vm630_vm6, %v618_v41, %v639_v55  ;;  %v697_v47 = vld [vmem:[%s2652_s3] sm:$0xff] }
 0x10e   : > { %v650_v52 = vadd.f32 %v649_v45, %v2044_v39  ;;  %v673_v53 = vadd.f32 %v666_v46, %v665_v43  ;;  %v612_v54 = vpop.f32.mrf.mxu0  ;;  %v671_v10 = vmul.f32 %v2067_v3, %v2067_v3  ;;  %v698_v46 = vld [vmem:[%s2652_s3 + $0x8] sm:$0xff] }
 0x10f   : > { %v2059_v56 = vsel %vm628_vm5, %v610_v42, %v637_v49  ;;  %v613_v57 = vadd.f32 %v612_v54, %v514_v29  ;;  %v640_v61 = vmul.f32 %v632_v25, %v621_v50  ;;  %vm631_vm8 = vcmp.ge.f32.partialorder %v621_v50, 0.0 }
 0x110   : > { %v674_v59 = vadd.f32 %v673_v53, %v667_v51  ;;  %v651_v60 = vadd.f32 %v650_v52, %v2054_v48  ;;  %v669_v0 = vmul.f32 %v2059_v56, %v2059_v56  ;;  %v700_v52 = vld [vmem:[%s2652_s3 + $0x18] sm:$0xff]  ;;  %v699_v53 = vld [vmem:[%s2652_s3 + $0x10] sm:$0xff] }
 0x111   : > { %vm629_vm7 = vcmp.ge.f32.partialorder %v613_v57, 0.0  ;;  %v638_v62 = vmul.f32 %v632_v25, %v613_v57  ;;  %v2074_v8 = vsel %vm631_vm8, %v621_v50, %v640_v61  ;;  %v1848_v25 = vmov 2  }
 0x112   : > { %v652_v63 = vadd.f32 %v651_v60, %v2059_v56  ;;  %v675_v2 = vadd.f32 %v674_v59, %v668_v58  ;;  %v672_v13 = vmul.f32 %v2074_v8, %v2074_v8  ;;  %v701_v59 = vld [vmem:[%s2652_s3 + $0x20] sm:$0xff]  ;;  %v763_v60 = vld [vmem:[%s2653_s4 + $0x8] sm:$0xff] }
 0x113   : > { %v2069_v4 = vsel %vm629_vm7, %v613_v57, %v638_v62 }
 0x114   : > { %v670_v5 = vmul.f32 %v2069_v4, %v2069_v4  ;;  %v653_v6 = vadd.f32 %v652_v63, %v2069_v4  ;;  %v676_v7 = vadd.f32 %v675_v2, %v669_v0  ;;  %v702_v0 = vld [vmem:[%s2652_s3 + $0x28] sm:$0xff]  ;;  %v764_v2 = vld [vmem:[%s2653_s4 + $0x10] sm:$0xff] }
 0x116   : > { %v654_v9 = vadd.f32 %v653_v6, %v2067_v3  ;;  %v677_v11 = vadd.f32 %v676_v7, %v670_v5 }
 0x118   : > { %v655_v12 = vadd.f32 %v654_v9, %v2074_v8  ;;  %v678_v14 = vadd.f32 %v677_v11, %v671_v10  ;;  %v703_v9 = vld [vmem:[%s2652_s3 + $0x30] sm:$0xff]  ;;  %v765_v10 = vld [vmem:[%s2653_s4 + $0x18] sm:$0xff] }
 0x11a   : > { %656 = vadd.xlane.f32.xlu0 %v655_v12  ;;  %v679_v15 = vadd.f32 %v678_v14, %v672_v13  ;;  %v704_v14 = vld [vmem:[%s2652_s3 + $0x38] sm:$0xff]  ;;  %s1851_s3 = smov [#allocation6]  }
 0x11c   : > { %680 = vadd.xlane.f32.xlu1 %v679_v15  ;;  %v766_v15 = vld [vmem:[%s2653_s4 + $0x20] sm:$0xff] }
 0x12d   : > { %888 = vperm.xlu1 %1699, %v2085_v16  }
 0x130   : > { %883 = vperm.xlu0 %1698, %v2091_v17  }
 0x131   : > { %931 = vperm.xlu1 %1699, %v837_v18  }
 0x134   : > { %893 = vperm.xlu0 %1698, %v2100_v19  }
 0x135   : > { %1700 = vset.pattern.permute.xlu1 %v1847_v23 }
 0x136   : > { %978 = vperm.xlu1 %1700, %v2091_v17  }
 0x138   : > { %936 = vperm.xlu0 %1698, %v838_v20  }
 0x13a   : > { %1701 = vset.pattern.permute.xlu1 %v1846_v1 }
 0x13b   : > { %941 = vperm.xlu1 %1701, %v839_v24  }
 0x13c   : > { %898 = vperm.xlu0 %1698, %v2109_v21  }
 0x13f   : > { %1702 = vset.pattern.permute.xlu1 %v1847_v23 }
 0x140   : > { %903 = vperm.xlu0 %1698, %v2115_v22   ;;  %986 = vperm.xlu1 %1702, %v2100_v19  }
 0x144   : > { %1703 = vset.pattern.permute.xlu1 %v1848_v25 }
 0x145   : > { %1058 = vperm.xlu1 %1703, %v2085_v16  }
 0x149   : > { %1704 = vset.pattern.permute.xlu1 %v1846_v1 }
 0x14a   : > { %946 = vperm.xlu1 %1704, %v840_v26  }
 0x14e   : > { %1705 = vset.pattern.permute.xlu1 %v1847_v23 }
 0x14f   : > { %990 = vperm.xlu1 %1705, %v2109_v21  }
 0x153   : > { %1706 = vset.pattern.permute.xlu1 %v1846_v1 }
 0x1a3   : > { %v657_v27 = vpop.xlane.xlu0 %656 }
 0x1a4   : > { %v658_v28 = vrot.slane %v657_v27, 4 }
 0x1a5   : > { %v681_v29 = vpop.xlane.xlu1 %680 }
 0x1a6   : > { %v659_v30 = vadd.f32 %v658_v28, %v657_v27  ;;  %v682_v31 = vrot.slane %v681_v29, 4  ;;  %v767_v27 = vld [vmem:[%s2653_s4 + $0x28] sm:$0xff]  ;;  %v762_v28 = vld [vmem:[%s2653_s4] sm:$0xff] }
 0x1a8   : > { %v660_v32 = vrot.slane %v659_v30, 2  ;;  %v683_v33 = vadd.f32 %v682_v31, %v681_v29 }
 0x1aa   : > { %v661_v35 = vadd.f32 %v660_v32, %v659_v30  ;;  %v684_v36 = vrot.slane %v683_v33, 2  ;;  %v768_v32 = vld [vmem:[%s2653_s4 + $0x30] sm:$0xff] }
 0x1ac   : > { %v662_v37 = vrot.slane %v661_v35, 1  ;;  %v685_v38 = vadd.f32 %v684_v36, %v683_v33  ;;  %v850_v33 = vld [vmem:[%s2628_s5 + $0x28] sm:$0xff]  ;;  %v841_v36 = vld [vmem:[%s2629_s6 + $0x20] sm:$0xff] }
 0x1ae   : > { %v663_v41 = vadd.f32 %v662_v37, %v661_v35  ;;  %v686_v42 = vrot.slane %v685_v38, 1 }
 0x1b0   : > { %1624 = vpush %v663_v41  ;;  %v687_v43 = vadd.f32 %v686_v42, %v685_v38  ;;  %v842_v38 = vld [vmem:[%s2629_s6 + $0x28] sm:$0xff]  ;;  %v769_v41 = vld [vmem:[%s2653_s4 + $0x38] sm:$0xff] }
 0x1b2   : > { %1626 = vpush %v687_v43  ;;  %v843_v43 = vld [vmem:[%s2629_s6 + $0x30] sm:$0xff] }
 0x1e1   : > { %s1625_s15 = spop %1624 }
 0x1e2   : > { %s689_s0 = smul.f32 0.00012207031, %s1625_s15 }
 0x1e3   : > { %s1627_s16 = spop %1626 }
 0x1e4   : > { %s691_s21 = smul.f32 %s689_s0, %s689_s0  ;;  %v770_v54 = vstv %s689_s0 }
 0x1e5   : > { %s690_s22 = smul.f32 0.00012207031, %s1627_s16 }
 0x1e7   : > { %s692_s17 = ssub.f32 %s690_s22, %s691_s21 }
 0x1e9   : > { %s693_s23 = sadd.f32 1e-05, %s692_s17 }
 0x1eb   : > { %v694_v44 = vstv %s693_s23  ;;  %s1850_s23 = smov 2  }
 0x1ec   : > { %1728 = vrsqrt.f32 %v694_v44  ;;  %v851_v44 = vld [vmem:[%s2628_s5 + $0x30] sm:$0xff] }
 0x1f9   : > { %v1729_v45 = vpop.eup %1728 }
 0x1fa   : > { %1628 = vpush %v1729_v45  ;;  %v2208_v45 = vld [vmem:[%s2628_s5 + $0x38] sm:$0xff] }
 0x22b   : > { %s1629_s2 = spop %1628 }
 0x22c   : > { %v705_v49 = vstv %s1629_s2  ;;  %s1849_s2 = smov 126  }
 0x22d   : > { %v707_v50 = vmul.f32 %v705_v49, %v698_v46  ;;  %v706_v51 = vmul.f32 %v705_v49, %v697_v47  ;;  %v709_v55 = vmul.f32 %v705_v49, %v700_v52  ;;  %v708_v57 = vmul.f32 %v705_v49, %v699_v53 }
 0x22e   : > { %v710_v61 = vmul.f32 %v705_v49, %v701_v59  ;;  %v711_v5 = vmul.f32 %v705_v49, %v702_v0  ;;  %v712_v11 = vmul.f32 %v705_v49, %v703_v9  ;;  %v713_v18 = vmul.f32 %v705_v49, %v704_v14 }
 0x22f   : > { %721 = vperm.xlu1 %1706, %v707_v50   ;;  %716 = vperm.xlu0 %1698, %v706_v51   ;;  %v772_v58 = vmul.f32 %v770_v54, %v707_v50  ;;  %v773_v63 = vmul.f32 %v770_v54, %v708_v57  ;;  %v774_v7 = vmul.f32 %v770_v54, %v709_v55 }
 0x230   : > { %v775_v13 = vmul.f32 %v770_v54, %v710_v61  ;;  %v776_v24 = vmul.f32 %v770_v54, %v711_v5  ;;  %v771_v26 = vmul.f32 %v770_v54, %v706_v51  ;;  %v777_v31 = vmul.f32 %v770_v54, %v712_v11 }
 0x231   : > { %v780_v62 = vsub.f32 %v763_v60, %v772_v58  ;;  %v781_v6 = vsub.f32 %v764_v2, %v773_v63  ;;  %v782_v12 = vsub.f32 %v765_v10, %v774_v7  ;;  %v778_v37 = vmul.f32 %v770_v54, %v713_v18 }
 0x232   : > { %v783_v20 = vsub.f32 %v766_v15, %v775_v13  ;;  %v784_v29 = vsub.f32 %v767_v27, %v776_v24  ;;  %v779_v30 = vsub.f32 %v762_v28, %v771_v26  ;;  %v785_v35 = vsub.f32 %v768_v32, %v777_v31 }
 0x233   : > { %731 = vperm.xlu1 %1706, %v709_v55   ;;  %726 = vperm.xlu0 %1698, %v708_v57   ;;  %v786_v42 = vsub.f32 %v769_v41, %v778_v37 }
 0x237   : > { %736 = vperm.xlu1 %1706, %v710_v61   ;;  %794 = vperm.xlu0 %1698, %v780_v62  }
 0x23b   : > { %741 = vperm.xlu1 %1706, %v711_v5   ;;  %799 = vperm.xlu0 %1698, %v781_v6  }
 0x23f   : > { %746 = vperm.xlu1 %1706, %v712_v11   ;;  %804 = vperm.xlu0 %1698, %v782_v12  }
 0x243   : > { %751 = vperm.xlu1 %1706, %v713_v18   ;;  %809 = vperm.xlu0 %1698, %v783_v20  }
 0x247   : > { %814 = vperm.xlu0 %1698, %v784_v29   ;;  %789 = vperm.xlu1 %1706, %v779_v30  }
 0x24b   : > { %819 = vperm.xlu0 %1698, %v785_v35   ;;  %908 = vperm.xlu1 %1706, %v850_v33  }
 0x24f   : > { %951 = vperm.xlu0 %1698, %v841_v36   ;;  %1707 = vset.pattern.permute.xlu1 %v1847_v23 }
 0x250   : > { %994 = vperm.xlu1 %1707, %v2115_v22  }
 0x253   : > { %956 = vperm.xlu0 %1698, %v842_v38  }
 0x254   : > { %1708 = vset.pattern.permute.xlu1 %v1846_v1 }
 0x255   : > { %824 = vperm.xlu1 %1708, %v786_v42  }
 0x257   : > { %961 = vperm.xlu0 %1698, %v843_v43  }
 0x259   : > { %1709 = vset.pattern.permute.xlu1 %v1848_v25 }
 0x25a   : > { %1066 = vperm.xlu1 %1709, %v2109_v21  }
 0x25b   : > { %1714 = vset.pattern.permute.xlu0 %v1847_v23 }
 0x25c   : > { %982 = vperm.xlu0 %1714, %v2085_v16   ;;  %v844_v16 = vld [vmem:[%s2629_s6 + $0x38] sm:$0xff] }
 0x25e   : > { %1710 = vset.pattern.permute.xlu1 %v1846_v1 }
 0x25f   : > { %913 = vperm.xlu1 %1710, %v851_v44  }
 0x260   : > { %1006 = vperm.xlu0 %1714, %v2208_v45  }
 0x263   : > { %1711 = vset.pattern.permute.xlu1 %v1847_v23 }
 0x264   : > { %998 = vperm.xlu1 %1711, %v850_v33   ;;  %1718 = vset.pattern.permute.xlu0 %v1848_v25 }
 0x265   : > { %1054 = vperm.xlu0 %1718, %v2091_v17   ;;  %v2225_v17 = vpop.permute.xlu1 %888 }
 0x268   : > { %1712 = vset.pattern.permute.xlu1 %v1848_v25 }
 0x269   : > { %1070 = vperm.xlu1 %1712, %v2115_v22   ;;  %1062 = vperm.xlu0 %1718, %v2100_v19   ;;  %v2229_v19 = vpop.permute.xlu1 %931 }
 0x26d   : > { %1713 = vset.pattern.permute.xlu1 %v1846_v1  ;;  %v2231_v21 = vpop.permute.xlu1 %978 }
 0x26e   : > { %918 = vperm.xlu1 %1713, %v2208_v45  }
 0x271   : > { %v2234_v22 = vpop.permute.xlu1 %941 }
 0x272   : > { %1715 = vset.pattern.permute.xlu1 %v1847_v23  ;;  %v2236_v23 = vpop.permute.xlu0 %883 }
 0x273   : > { %1002 = vperm.xlu1 %1715, %v851_v44  }
 0x275   : > { %v2238_v46 = vpop.permute.xlu1 %986 }
 0x276   : > { %v2240_v47 = vpop.permute.xlu0 %893 }
 0x277   : > { %1716 = vset.pattern.permute.xlu1 %v1848_v25 }
 0x278   : > { %1074 = vperm.xlu1 %1716, %v850_v33  }
 0x279   : > { %v2242_v49 = vpop.permute.xlu1 %1058 }
 0x27a   : > { %v2244_v50 = vpop.permute.xlu0 %936 }
 0x27c   : > { %1717 = vset.pattern.permute.xlu1 %v1846_v1 }
 0x27d   : > { %966 = vperm.xlu1 %1717, %v844_v16  }
 0x27e   : > { %v2248_v51 = vpop.permute.xlu0 %898 }
 0x281   : > { %1719 = vset.pattern.permute.xlu1 %v1848_v25  ;;  %v2246_v25 = vpop.permute.xlu1 %946 }
 0x282   : > { %1078 = vperm.xlu1 %1719, %v851_v44   ;;  %v2250_v53 = vpop.permute.xlu0 %903 }
 0x285   : > { %v991_v52 = vpop.permute.xlu1 %990 }
 0x286   : > { %1721 = vset.pattern.permute.xlu1 %v1846_v1 }
 0x2aa   : > { %v722_v54 = vpop.permute.xlu1 %721  ;;  %v717_v55 = vpop.permute.xlu0 %716 }
 0x2ab   : > { %v755_v59 = vmul.f32 %v722_v54, %v2046_v40  ;;  %v754_v13 = vmul.f32 %v717_v55, %v2042_v34  ;;  %v835_v54 = vlaneseq }
 0x2ae   : > { %v732_v57 = vpop.permute.xlu1 %731  ;;  %v727_v58 = vpop.permute.xlu0 %726 }
 0x2af   : > { %v757_v2 = vmul.f32 %v732_v57, %v2054_v48  ;;  %v756_v14 = vmul.f32 %v727_v58, %v2044_v39  ;;  %v836_v58 = vand.u32 127, %v835_v54 }
 0x2b2   : > { %v737_v60 = vpop.permute.xlu1 %736  ;;  %v795_v61 = vpop.permute.xlu0 %794 }
 0x2b3   : > { %v2253_v62 = vadd.f32 %v795_v61, %v755_v59  ;;  %v758_v9 = vmul.f32 %v737_v60, %v2059_v56  ;;  %v2326_v59 = vadd.s32 4294967294, %v836_v58 }
 0x2b5   : > { %1027 = vrot.lane.b32.xlu0 %v2253_v62, %s1849_s2  ;;  %vm870_vm9 = vcmp.ge.s32.totalorder %v2326_v59, 0 }
 0x2b6   : > { %v742_v63 = vpop.permute.xlu1 %741  ;;  %v800_v0 = vpop.permute.xlu0 %799 }
 0x2b7   : > { %v2263_v18 = vadd.f32 %v800_v0, %v756_v14  ;;  %v759_v24 = vmul.f32 %v742_v63, %v2069_v4  ;;  %v2328_v63 = vadd.s32 2, %v836_v58 }
 0x2b9   : > { %vm1043_vm10 = vcmp.lt.s32.totalorder %v2328_v63, 128 }
 0x2ba   : > { %v747_v5 = vpop.permute.xlu1 %746  ;;  %v805_v6 = vpop.permute.xlu0 %804 }
 0x2bb   : > { %v830_v7 = vadd.f32 %v805_v6, %v757_v2  ;;  %v760_v28 = vmul.f32 %v747_v5, %v2067_v3 }
 0x2bd   : > { %v2259_v10 = vmul.f32 %v991_v52, %v830_v7 }
 0x2be   : > { %v752_v40 = vpop.permute.xlu1 %751  ;;  %v810_v11 = vpop.permute.xlu0 %809 }
 0x2bf   : > { %v831_v12 = vadd.f32 %v810_v11, %v758_v9  ;;  %v761_v30 = vmul.f32 %v752_v40, %v2074_v8 }
 0x2c1   : > { %861 = vrot.lane.b32.xlu0 %v831_v12, %s1850_s23 }
 0x2c2   : > { %v790_v15 = vpop.permute.xlu1 %789  ;;  %v815_v20 = vpop.permute.xlu0 %814 }
 0x2c3   : > { %v2265_v48 = vadd.f32 %v790_v15, %v754_v13  ;;  %v2273_v34 = vadd.f32 %v815_v20, %v759_v24 }
 0x2c5   : > { %853 = vrot.lane.b32.xlu1 %v2265_v48, %s1850_s23  ;;  %1029 = vrot.lane.b32.xlu0 %v2263_v18, %s1849_s2 }
 0x2c6   : > { %v2271_v56 = vpop.permute.xlu1 %908  ;;  %v820_v26 = vpop.permute.xlu0 %819 }
 0x2c7   : > { %v2282_v4 = vadd.f32 %v820_v26, %v760_v28 }
 0x2c9   : > { %855 = vrot.lane.b32.xlu1 %v2253_v62, %s1850_s23  ;;  %863 = vrot.lane.b32.xlu0 %v2273_v34, %s1850_s23 }
 0x2ca   : > { %v2302_v8 = vpop.permute.xlu0 %951 }
 0x2cb   : > { %v995_v39 = vpop.permute.xlu1 %994 }
 0x2cc   : > { %v2277_v27 = vmul.f32 %v995_v39, %v831_v12 }
 0x2cd   : > { %857 = vrot.lane.b32.xlu1 %v2263_v18, %s1850_s23  ;;  %1031 = vrot.lane.b32.xlu0 %v830_v7, %s1849_s2 }
 0x2ce   : > { %v2306_v33 = vpop.permute.xlu0 %956 }
 0x2d0   : > { %v825_v29 = vpop.permute.xlu1 %824 }
 0x2d1   : > { %859 = vrot.lane.b32.xlu1 %v830_v7, %s1850_s23  ;;  %865 = vrot.lane.b32.xlu0 %v2282_v4, %s1850_s23  ;;  %v2286_v31 = vadd.f32 %v825_v29, %v761_v30 }
 0x2d2   : > { %v2310_v36 = vpop.permute.xlu0 %961 }
 0x2d5   : > { %1025 = vrot.lane.b32.xlu1 %v2265_v48, %s1849_s2  ;;  %867 = vrot.lane.b32.xlu0 %v2286_v31, %s1850_s23  ;;  %v2300_v3 = vpop.permute.xlu1 %1066  ;;  %s1753_s23 = sshll.u32 %s1851_s3, 4  ;;  %s1754_s23 = int_to_ptr.vmem [resolvable:$false] %s1753_s23 }
 0x2d9   : > { %1033 = vrot.lane.b32.xlu1 %v831_v12, %s1849_s2  ;;  %1082 = vperm.xlu0 %1718, %v2208_v45  }
 0x2da   : > { %v2304_v32 = vpop.permute.xlu1 %913 }
 0x2dd   : > { %1035 = vrot.lane.b32.xlu1 %v2273_v34, %s1849_s2  ;;  %1720 = vset.pattern.permute.xlu0 %v1846_v1  ;;  %v983_v1 = vpop.permute.xlu0 %982 }
 0x2de   : > { %v1010_v9 = vmul.f32 %v983_v1, %v2253_v62  ;;  %v1011_v62 = vmul.f32 %v2238_v46, %v2263_v18 }
 0x2df   : > { %v2308_v35 = vpop.permute.xlu1 %998 }
 0x2e1   : > { %1037 = vrot.lane.b32.xlu1 %v2282_v4, %s1849_s2  ;;  %v2316_v41 = vpop.permute.xlu0 %1006 }
 0x2e4   : > { %v2312_v37 = vpop.permute.xlu1 %1070 }
 0x2e5   : > { %1039 = vrot.lane.b32.xlu1 %v2286_v31, %s1849_s2  ;;  %v1055_v43 = vpop.permute.xlu0 %1054  ;;  %s2637_s2 = sshll.u32 %s1946_s29, 8 }
 0x2e9   : > { %v2314_v38 = vpop.permute.xlu1 %918  ;;  %v1063_v45 = vpop.permute.xlu0 %1062 }
 0x2ee   : > { %v2318_v42 = vpop.permute.xlu1 %1002 }
 0x2f3   : > { %v2320_v44 = vpop.permute.xlu1 %1074 }
 0x2f8   : > { %v2322_v16 = vpop.permute.xlu1 %966 }
 0x2fd   : > { %v2324_v55 = vpop.permute.xlu1 %1078 }
 0x327   : > { %v1028_v52 = vpop.permute.xlu0 %1027 }
 0x328   : > { %v1046_v40 = vsel %vm1043_vm10, %v1028_v52, 0.0  ;;  %v2358_v52 = vstv %s1567_s24 }
 0x329   : > { %v1086_v39 = vmul.f32 %v2242_v49, %v1046_v40 }
 0x333   : > { %v862_v57 = vpop.permute.xlu0 %861 }
 0x337   : > { %v854_v60 = vpop.permute.xlu1 %853  ;;  %v1030_v61 = vpop.permute.xlu0 %1029 }
 0x338   : > { %v873_v6 = vsel %vm870_vm9, %v854_v60, 0.0 }
 0x339   : > { %v921_v14 = vmul.f32 %v2236_v23, %v873_v6 }
 0x33b   : > { %v856_v0 = vpop.permute.xlu1 %855  ;;  %v864_v2 = vpop.permute.xlu0 %863  ;;  %v969_v29 = vadd.f32 %v2229_v19, %v921_v14 }
 0x33c   : > { %v874_v5 = vsel %vm870_vm9, %v856_v0, 0.0 }
 0x33d   : > { %v922_v7 = vmul.f32 %v2225_v17, %v874_v5  ;;  %v1047_v17 = vsel %vm1043_vm10, %v1030_v61, 0.0 }
 0x33e   : > { %v1087_v1 = vmul.f32 %v1063_v45, %v1047_v17 }
 0x33f   : > { %v970_v11 = vadd.f32 %v2244_v50, %v922_v7  ;;  %v858_v12 = vpop.permute.xlu1 %857  ;;  %v1032_v13 = vpop.permute.xlu0 %1031  ;;  %v877_v50 = vsel %vm870_vm9, %v862_v57, 0.0 }
 0x340   : > { %v875_v15 = vsel %vm870_vm9, %v858_v12, 0.0  ;;  %v925_v54 = vmul.f32 %v2250_v53, %v877_v50  ;;  %v1048_v19 = vsel %vm1043_vm10, %v1032_v13, 0.0 }
 0x341   : > { %v1018_v20 = vadd.f32 %v1010_v9, %v970_v11  ;;  %v923_v24 = vmul.f32 %v2240_v47, %v875_v15  ;;  %v878_v47 = vsel %vm870_vm9, %v864_v2, 0.0  ;;  %v1088_v53 = vmul.f32 %v2300_v3, %v1048_v19 }
 0x342   : > { %v926_v57 = vmul.f32 %v2271_v56, %v878_v47  ;;  %v973_v5 = vadd.f32 %v2302_v8, %v925_v54  ;;  %v1015_v3 = vmul.f32 %v2318_v42, %v2282_v4  ;;  %v1016_v54 = vmul.f32 %v2316_v41, %v2286_v31 }
 0x343   : > { %v971_v26 = vadd.f32 %v2234_v22, %v923_v24  ;;  %v860_v23 = vpop.permute.xlu1 %859  ;;  %v866_v28 = vpop.permute.xlu0 %865  ;;  %v1094_v30 = vadd.f32 %v1086_v39, %v1018_v20  ;;  %v1009_v22 = vmul.f32 %v2231_v21, %v2265_v48 }
 0x344   : > { %v876_v49 = vsel %vm870_vm9, %v860_v23, 0.0  ;;  %v879_v0 = vsel %vm870_vm9, %v866_v28, 0.0  ;;  %v974_v8 = vadd.f32 %v2306_v33, %v926_v57  ;;  %v1021_v4 = vadd.f32 %v2277_v27, %v973_v5 }
 0x345   : > { %v1019_v46 = vadd.f32 %v1011_v62, %v971_v26  ;;  %v924_v18 = vmul.f32 %v2248_v51, %v876_v49  ;;  %v1111_v45 = vmul.f32 %v2358_v52, %v1094_v30  ;;  %v1017_v51 = vadd.f32 %v1009_v22, %v969_v29 }
 0x346   : > { %vm1102_vm11 = vcmp.ge.f32.partialorder %v1094_v30, 0.0  ;;  %v927_v9 = vmul.f32 %v2304_v32, %v879_v0 }
 0x347   : > { %v1095_v58 = vadd.f32 %v1087_v1, %v1019_v46  ;;  %v972_v60 = vadd.f32 %v2246_v25, %v924_v18  ;;  %v1026_v61 = vpop.permute.xlu1 %1025  ;;  %v868_v56 = vpop.permute.xlu0 %867  ;;  %v1014_v25 = vmul.f32 %v2308_v35, %v2273_v34  ;;  %v2382_v12 = vsel %vm1102_vm11, %v1094_v30, %v1111_v45 }
 0x348   : > { %v1045_v21 = vsel %vm1043_vm10, %v1026_v61, 0.0  ;;  %v975_v59 = vadd.f32 %v2310_v36, %v927_v9  ;;  %v1143_v14 = vmul.f32 %v2382_v12, %v2382_v12 }
 0x349   : > { %v1020_v48 = vadd.f32 %v2259_v10, %v972_v60  ;;  %v1085_v2 = vmul.f32 %v1055_v43, %v1045_v21  ;;  %v1112_v6 = vmul.f32 %v2358_v52, %v1095_v58  ;;  %vm1103_vm12 = vcmp.ge.f32.partialorder %v1095_v58, 0.0 }
 0x34a   : > { %v880_v10 = vsel %vm870_vm9, %v868_v56, 0.0  ;;  %v1023_v30 = vadd.f32 %v1015_v3, %v975_v59 }
 0x34b   : > { %v1096_v7 = vadd.f32 %v1088_v53, %v1020_v48  ;;  %v1093_v40 = vadd.f32 %v1085_v2, %v1017_v51  ;;  %v1034_v11 = vpop.permute.xlu1 %1033  ;;  %v2391_v43 = vsel %vm1103_vm12, %v1095_v58, %v1112_v6  ;;  %v928_v33 = vmul.f32 %v2314_v38, %v880_v10 }
 0x34c   : > { %v1049_v34 = vsel %vm1043_vm10, %v1034_v11, 0.0  ;;  %v1144_v62 = vmul.f32 %v2391_v43, %v2391_v43 }
 0x34d   : > { %v1113_v35 = vmul.f32 %v2358_v52, %v1096_v7  ;;  %vm1101_vm13 = vcmp.ge.f32.partialorder %v1093_v40, 0.0  ;;  %v1110_v32 = vmul.f32 %v2358_v52, %v1093_v40  ;;  %vm1104_vm14 = vcmp.ge.f32.partialorder %v1096_v7, 0.0 }
 0x34e   : > { %v1089_v42 = vmul.f32 %v2312_v37, %v1049_v34  ;;  %v1022_v37 = vadd.f32 %v1014_v25, %v974_v8  ;;  %v976_v23 = vadd.f32 %v2322_v16, %v928_v33 }
 0x34f   : > { %v2396_v13 = vsel %vm1101_vm13, %v1093_v40, %v1110_v32  ;;  %v1036_v15 = vpop.permute.xlu1 %1035  ;;  %v2408_v17 = vsel %vm1104_vm14, %v1096_v7, %v1113_v35 }
 0x350   : > { %v1126_v20 = vadd.f32 %v2382_v12, %v2396_v13  ;;  %v1142_v24 = vmul.f32 %v2396_v13, %v2396_v13  ;;  %v1097_v39 = vadd.f32 %v1089_v42, %v1021_v4  ;;  %v1050_v27 = vsel %vm1043_vm10, %v1036_v15, 0.0 }
 0x351   : > { %v1090_v36 = vmul.f32 %v2320_v44, %v1050_v27  ;;  %v1145_v49 = vmul.f32 %v2408_v17, %v2408_v17  ;;  %v1181_v27 = vld [vmem:[%s2630_s7 + $0x38] sm:$0xff] }
 0x352   : > { %v1150_v38 = vadd.f32 %v1143_v14, %v1142_v24  ;;  %vm1105_vm15 = vcmp.ge.f32.partialorder %v1097_v39, 0.0  ;;  %v1114_v50 = vmul.f32 %v2358_v52, %v1097_v39  ;;  %v1127_v26 = vadd.f32 %v1126_v20, %v2391_v43 }
 0x353   : > { %v1098_v28 = vadd.f32 %v1090_v36, %v1022_v37  ;;  %v1038_v29 = vpop.permute.xlu1 %1037  ;;  %v1180_v37 = vld [vmem:[%s2630_s7 + $0x30] sm:$0xff] }
 0x354   : > { %v1051_v47 = vsel %vm1043_vm10, %v1038_v29, 0.0  ;;  %v1128_v44 = vadd.f32 %v1127_v26, %v2408_v17  ;;  %v1151_v1 = vadd.f32 %v1150_v38, %v1144_v62  ;;  %v2420_v46 = vsel %vm1105_vm15, %v1097_v39, %v1114_v50  ;;  %v1083_v60 = vpop.permute.xlu0 %1082  ;;  %v1178_v50 = vld [vmem:[%s2630_s7 + $0x20] sm:$0xff]  ;;  %v1176_v26 = vld [vmem:[%s2630_s7 + $0x10] sm:$0xff]  ;;  %v1179_v29 = vld [vmem:[%s2630_s7 + $0x28] sm:$0xff] }
 0x355   : > { %vm1106_vm0 = vcmp.ge.f32.partialorder %v1098_v28, 0.0  ;;  %v1115_v18 = vmul.f32 %v2358_v52, %v1098_v28  ;;  %v1091_v22 = vmul.f32 %v2324_v55, %v1051_v47  ;;  %v1146_v0 = vmul.f32 %v2420_v46, %v2420_v46 }
 0x356   : > { %v1152_v16 = vadd.f32 %v1151_v1, %v1145_v49  ;;  %v1129_v45 = vadd.f32 %v1128_v44, %v2420_v46  ;;  %v1024_v55 = vadd.f32 %v1016_v54, %v976_v23 }
 0x357   : > { %v1099_v19 = vadd.f32 %v1091_v22, %v1023_v30  ;;  %v1040_v57 = vpop.permute.xlu1 %1039  ;;  %v2426_v58 = vsel %vm1106_vm0, %v1098_v28, %v1115_v18  ;;  %v1174_v30 = vld [vmem:[%s2630_s7] sm:$0xff]  ;;  %v1177_v18 = vld [vmem:[%s2630_s7 + $0x18] sm:$0xff]  ;;  %v1241_v22 = vld [vmem:[%s2631_s8 + $0x10] sm:$0xff] }
 0x358   : > { %v1052_v61 = vsel %vm1043_vm10, %v1040_v57, 0.0  ;;  %v1147_v31 = vmul.f32 %v2426_v58, %v2426_v58  ;;  %v1153_v41 = vadd.f32 %v1152_v16, %v1146_v0  ;;  %v1130_v63 = vadd.f32 %v1129_v45, %v2426_v58  ;;  %v1175_v57 = vld [vmem:[%s2630_s7 + $0x8] sm:$0xff] }
 0x359   : > { %v1116_v51 = vmul.f32 %v2358_v52, %v1099_v19  ;;  %v1092_v21 = vmul.f32 %v1083_v60, %v1052_v61  ;;  %vm1107_vm1 = vcmp.ge.f32.partialorder %v1099_v19, 0.0  ;;  %v1239_v60 = vld [vmem:[%s2631_s8] sm:$0xff] }
 0x35a   : > { %v1154_v5 = vadd.f32 %v1153_v41, %v1147_v31  ;;  %v1246_v41 = vld [vmem:[%s2631_s8 + $0x38] sm:$0xff] }
 0x35b   : > { %v1100_v53 = vadd.f32 %v1092_v21, %v1024_v55  ;;  %v2436_v48 = vsel %vm1107_vm1, %v1099_v19, %v1116_v51  ;;  %v1245_v51 = vld [vmem:[%s2631_s8 + $0x30] sm:$0xff]  ;;  %v1320_v55 = vld [vmem:[%s2633_s10] sm:$0xff] }
 0x35c   : > { %v1148_v2 = vmul.f32 %v2436_v48, %v2436_v48  ;;  %v1131_v25 = vadd.f32 %v1130_v63, %v2436_v48 }
 0x35d   : > { %v1117_v56 = vmul.f32 %v2358_v52, %v1100_v53  ;;  %vm1108_vm2 = vcmp.ge.f32.partialorder %v1100_v53, 0.0 }
 0x35e   : > { %v1155_v40 = vadd.f32 %v1154_v5, %v1148_v2 }
 0x35f   : > { %v2443_v6 = vsel %vm1108_vm2, %v1100_v53, %v1117_v56  ;;  %v1322_v53 = vld [vmem:[%s2633_s10 + $0x10] sm:$0xff]  ;;  %v1243_v56 = vld [vmem:[%s2631_s8 + $0x20] sm:$0xff] }
 0x360   : > { %v1132_v7 = vadd.f32 %v1131_v25, %v2443_v6  ;;  %v1149_v9 = vmul.f32 %v2443_v6, %v2443_v6 }
 0x362   : > { %1133 = vadd.xlane.f32.xlu0 %v1132_v7  ;;  %v1156_v11 = vadd.f32 %v1155_v40, %v1149_v9  ;;  %v1244_v7 = vld [vmem:[%s2631_s8 + $0x28] sm:$0xff] }
 0x364   : > { %1157 = vadd.xlane.f32.xlu1 %v1156_v11  ;;  %v1242_v11 = vld [vmem:[%s2631_s8 + $0x18] sm:$0xff] }
 0x3eb   : > { %v1134_v3 = vpop.xlane.xlu0 %1133 }
 0x3ec   : > { %v1135_v10 = vrot.slane %v1134_v3, 4 }
 0x3ed   : > { %v1158_v34 = vpop.xlane.xlu1 %1157 }
 0x3ee   : > { %v1136_v8 = vadd.f32 %v1135_v10, %v1134_v3  ;;  %v1159_v52 = vrot.slane %v1158_v34, 4 }
 0x3f0   : > { %v1137_v35 = vrot.slane %v1136_v8, 2  ;;  %v1160_v32 = vadd.f32 %v1159_v52, %v1158_v34  ;;  %v1240_v34 = vld [vmem:[%s2631_s8 + $0x8] sm:$0xff] }
 0x3f1   : > { %v1321_v52 = vld [vmem:[%s2633_s10 + $0x8] sm:$0xff] }
 0x3f2   : > { %v1161_v4 = vrot.slane %v1160_v32, 2  ;;  %v1138_v42 = vadd.f32 %v1137_v35, %v1136_v8  ;;  %v1726_v35 = vld [vmem:[%s2632_s9] sm:$0xff]  }
 0x3f3   : > { %1620 = vmatprep.mubr.msk.bf16.mxu1 %vm1354_vm3, %v1726_v35 }
 0x3f4   : > { %v1139_v59 = vrot.slane %v1138_v42, 1  ;;  %v1162_v14 = vadd.f32 %v1161_v4, %v1160_v32  ;;  %v1323_v32 = vld [vmem:[%s2633_s10 + $0x18] sm:$0xff] }
 0x3f6   : > { %v1140_v33 = vadd.f32 %v1139_v59, %v1138_v42  ;;  %v1163_v15 = vrot.slane %v1162_v14, 1 }
 0x3f8   : > { %1630 = vpush %v1140_v33  ;;  %v1164_v20 = vadd.f32 %v1163_v15, %v1162_v14 }
 0x3fa   : > { %1632 = vpush %v1164_v20 }
 0x429   : > { %s1631_s30 = spop %1630 }
 0x42a   : > { %s1166_s0 = smul.f32 0.00012207031, %s1631_s30  ;;  %s2537_s30 = scalar_lea.hbm %s2636_s13, %s2637_s2 }
 0x42b   : > { %s1633_s20 = spop %1632 }
 0x42c   : > { %s1168_s15 = smul.f32 %s1166_s0, %s1166_s0  ;;  %v1247_v47 = vstv %s1166_s0 }
 0x42d   : > { %s1167_s16 = smul.f32 0.00012207031, %s1633_s20 }
 0x42f   : > { %s1169_s21 = ssub.f32 %s1167_s16, %s1168_s15 }
 0x431   : > { %s1170_s22 = sadd.f32 1e-05, %s1169_s21  ;;  %s2525_s21 = sand.u32 1, %s1835_s26  }
 0x433   : > { %v1171_v24 = vstv %s1170_s22  ;;  %s1563_s22 = sshll.u32 %s2525_s21, 4 }
 0x434   : > { %1730 = vrsqrt.f32 %v1171_v24  ;;  %s458_s1 = scalar_lea.vmem [#allocation6], %s1563_s22  ;;  %s2539_s20 = scalar_lea.vmem [#allocation5], %s1563_s22 }
 0x435   : > { %s1451_s17 = sshll.u32 %s458_s1, 4  ;;  %s2529_s17 = int_to_ptr.vmem [resolvable:$true] %s1451_s17 }
 0x436   : > { %s1749_s16 = scalar_lea.vmem %s2529_s17, 256  ;;  %p1756_p13 = scmp.lt.s32.totalorder %s2529_s17, %s1754_s23 }
 0x437   : > { %p1750_p9 = scmp.ne.s32.totalorder %s2529_s17, %s1749_s16 }
 0x439   : > { %p1751_p10 = pnand %p1750_p9, %p1963_p5 }
 0x43b   : > { %p1752_p12 = pneg %p1751_p10 }
 0x441   : > { %v1731_v39 = vpop.eup %1730 }
 0x442   : > { %1634 = vpush %v1731_v39 }
 0x473   : > { %s1635_s24 = spop %1634 }
 0x474   : > { %v1182_v36 = vstv %s1635_s24  ;;  %s1755_s24 = scalar_lea.vmem %s1754_s23, 512 }
 0x475   : > { %v1190_v62 = vmul.f32 %v1182_v36, %v1181_v27  ;;  %v1189_v38 = vmul.f32 %v1182_v36, %v1180_v37  ;;  %v1187_v23 = vmul.f32 %v1182_v36, %v1178_v50  ;;  %v1185_v28 = vmul.f32 %v1182_v36, %v1176_v26  ;;  %p1757_p0 = scmp.lt.s32.totalorder %s1755_s24, %s1749_s16 }
 0x476   : > { %v1188_v44 = vmul.f32 %v1182_v36, %v1179_v29  ;;  %v1183_v49 = vmul.f32 %v1182_v36, %v1174_v30  ;;  %v1186_v16 = vmul.f32 %v1182_v36, %v1177_v18  ;;  %v1184_v61 = vmul.f32 %v1182_v36, %v1175_v57 }
 0x477   : > { %1228 = vperm.xlu1 %1721, %v1190_v62   ;;  %1223 = vperm.xlu0 %1720, %v1189_v38   ;;  %v1250_v1 = vmul.f32 %v1247_v47, %v1185_v28  ;;  %v1254_v0 = vmul.f32 %v1247_v47, %v1189_v38  ;;  %v1255_v31 = vmul.f32 %v1247_v47, %v1190_v62  ;;  %p1758_p1 = por %p1757_p0, %p1756_p13 }
 0x478   : > { %v1248_v19 = vmul.f32 %v1247_v47, %v1183_v49  ;;  %v1252_v63 = vmul.f32 %v1247_v47, %v1187_v23  ;;  %v1253_v25 = vmul.f32 %v1247_v47, %v1188_v44  ;;  %v1251_v9 = vmul.f32 %v1247_v47, %v1186_v16 }
 0x479   : > { %v1258_v54 = vsub.f32 %v1241_v22, %v1250_v1  ;;  %v1262_v21 = vsub.f32 %v1245_v51, %v1254_v0  ;;  %v1263_v2 = vsub.f32 %v1246_v41, %v1255_v31  ;;  %v1249_v3 = vmul.f32 %v1247_v47, %v1184_v61  ;;  %v1732_v41 = vld [vmem:[%s2008_s11] sm:$0xff]  ;;  %p1759_p2 = pnand %p1758_p1, %p1752_p12 }
 0x47a   : > { %v1256_v45 = vsub.f32 %v1239_v60, %v1248_v19  ;;  %v1260_v5 = vsub.f32 %v1243_v56, %v1252_v63  ;;  %v1261_v40 = vsub.f32 %v1244_v7, %v1253_v25  ;;  %v1259_v10 = vsub.f32 %v1242_v11, %v1251_v9 }
 0x47b   : > { %1213 = vperm.xlu1 %1721, %v1187_v23   ;;  %1203 = vperm.xlu0 %1720, %v1185_v28   ;;  %v1257_v8 = vsub.f32 %v1240_v34, %v1249_v3 }
 0x47f   : > { %1218 = vperm.xlu1 %1721, %v1188_v44   ;;  %1193 = vperm.xlu0 %1720, %v1183_v49  }
 0x483   : > { %1208 = vperm.xlu1 %1721, %v1186_v16   ;;  %1276 = vperm.xlu0 %1720, %v1258_v54  }
 0x487   : > { %1198 = vperm.xlu1 %1721, %v1184_v61   ;;  %1266 = vperm.xlu0 %1720, %v1256_v45  }
 0x48b   : > { %1296 = vperm.xlu1 %1721, %v1262_v21   ;;  %1326 = vperm.xlu0 %1720, %v1320_v55  }
 0x48f   : > { %1301 = vperm.xlu1 %1721, %v1263_v2   ;;  %1336 = vperm.xlu0 %1720, %v1322_v53  }
 0x493   : > { %1286 = vperm.xlu1 %1721, %v1260_v5  }
 0x497   : > { %1291 = vperm.xlu1 %1721, %v1261_v40  }
 0x49b   : > { %1281 = vperm.xlu1 %1721, %v1259_v10  }
 0x49f   : > { %1271 = vperm.xlu1 %1721, %v1257_v8  }
 0x4a3   : > { %1331 = vperm.xlu1 %1721, %v1321_v52  }
 0x4a7   : > { %1341 = vperm.xlu1 %1721, %v1323_v32  }
 0x4f2   : > { %v1229_v4 = vpop.permute.xlu1 %1228  ;;  %v1224_v33 = vpop.permute.xlu0 %1223 }
 0x4f3   : > { %v1238_v39 = vmul.f32 %v1229_v4, %v2443_v6  ;;  %v1237_v27 = vmul.f32 %v1224_v33, %v2436_v48 }
 0x4f6   : > { %v1214_v42 = vpop.permute.xlu1 %1213  ;;  %v1204_v20 = vpop.permute.xlu0 %1203 }
 0x4f7   : > { %v1235_v23 = vmul.f32 %v1214_v42, %v2420_v46  ;;  %v1233_v6 = vmul.f32 %v1204_v20, %v2391_v43 }
 0x4fa   : > { %v1219_v59 = vpop.permute.xlu1 %1218  ;;  %v1194_v38 = vpop.permute.xlu0 %1193 }
 0x4fb   : > { %v1236_v28 = vmul.f32 %v1219_v59, %v2426_v58  ;;  %v1231_v46 = vmul.f32 %v1194_v38, %v2396_v13 }
 0x4fe   : > { %v1209_v14 = vpop.permute.xlu1 %1208  ;;  %v1277_v29 = vpop.permute.xlu0 %1276 }
 0x4ff   : > { %v1234_v48 = vmul.f32 %v1209_v14, %v2408_v17  ;;  %v1306_v18 = vadd.f32 %v1277_v29, %v1233_v6  ;;  %v1727_v17 = vld [vmem:[%s2632_s9 + $0x8] sm:$0xff]  }
 0x502   : > { %v1199_v15 = vpop.permute.xlu1 %1198  ;;  %v1267_v16 = vpop.permute.xlu0 %1266 }
 0x503   : > { %v1232_v58 = vmul.f32 %v1199_v15, %v2382_v12  ;;  %v1304_v57 = vadd.f32 %v1267_v16, %v1231_v46 }
 0x506   : > { %v1297_v24 = vpop.permute.xlu1 %1296  ;;  %v1327_v61 = vpop.permute.xlu0 %1326 }
 0x507   : > { %v1310_v36 = vadd.f32 %v1297_v24, %v1237_v27 }
 0x50a   : > { %v1302_v37 = vpop.permute.xlu1 %1301  ;;  %v1337_v13 = vpop.permute.xlu0 %1336 }
 0x50b   : > { %v1311_v62 = vadd.f32 %v1302_v37, %v1238_v39 }
 0x50d   : > { %v1319_v50 = vpack.c.bf16 %v1311_v62, %v1310_v36 }
 0x50e   : > { %v1287_v26 = vpop.permute.xlu1 %1286 }
 0x50f   : > { %1612 = vmatprep.subr.bf16.mxu1 %v1319_v50  ;;  %v1308_v47 = vadd.f32 %v1287_v26, %v1235_v23 }
 0x510   : > { %1613 = vmatpush3.bf16.msra.mxu1 %v1319_v50 }
 0x512   : > { %v1292_v30 = vpop.permute.xlu1 %1291 }
 0x513   : > { %v1309_v44 = vadd.f32 %v1292_v30, %v1236_v28 }
 0x515   : > { %v1318_v49 = vpack.c.bf16 %v1309_v44, %v1308_v47 }
 0x516   : > { %v1282_v1 = vpop.permute.xlu1 %1281 }
 0x517   : > { %v1307_v22 = vadd.f32 %v1282_v1, %v1234_v48  ;;  %1614 = vmatprep.subr.bf16.mxu1 %v1318_v49 }
 0x518   : > { %1615 = vmatpush3.bf16.msra.mxu1 %v1318_v49 }
 0x519   : > { %v1317_v54 = vpack.c.bf16 %v1307_v22, %v1306_v18 }
 0x51a   : > { %v1272_v19 = vpop.permute.xlu1 %1271 }
 0x51b   : > { %v1305_v60 = vadd.f32 %v1272_v19, %v1232_v58  ;;  %1616 = vmatprep.subr.bf16.mxu1 %v1317_v54 }
 0x51c   : > { %1617 = vmatpush3.bf16.msra.mxu1 %v1317_v54 }
 0x51d   : > { %v1316_v43 = vpack.c.bf16 %v1305_v60, %v1304_v57 }
 0x51e   : > { %v1332_v12 = vpop.permute.xlu1 %1331 }
 0x51f   : > { %1618 = vmatprep.subr.bf16.mxu1 %v1316_v43 }
 0x520   : > { %1619 = vmatpush3.bf16.msra.mxu1 %v1316_v43 }
 0x522   : > { %v1342_v21 = vpop.permute.xlu1 %1341 }
 0x523   : > { %1621 = vmatmul.mubr.msk.bf16.vlgmr.msra.gmra.mxu1 %vm1354_vm3, %v1727_v17 }
 0x5e3   : > { %v1622_v45 = vpop.f32.mrf.mxu1 }
 0x5e4   : > { %v1404_v0 = vadd.f32 %v1622_v45, %v1337_v13 }
 0x5e5   : > { %v1395_v51 = vpop.f32.mrf.mxu1 }
 0x5e6   : > { %1414 = vst [vmem:[%s458_s1] sm:$0xff] %v1404_v0  ;;  %v1396_v55 = vadd.f32 %v1395_v51, %v1327_v61 }
 0x5e7   : > { %v1623_v31 = vpop.f32.mrf.mxu1 }
 0x5e8   : > { %v1410_v53 = vadd.f32 %v1732_v41, %v1396_v55  ;;  %v1407_v63 = vadd.f32 %v1623_v31, %v1342_v21 }
 0x5e9   : > { %v1398_v2 = vpop.f32.mrf.mxu1 }
 0x5ea   : > { %1412 = vst [vmem:[%s2539_s20] sm:$0xff] %v1410_v53  ;;  %1415 = vst [vmem:[%s458_s1 + $0x8] sm:$0xff] %v1407_v63  ;;  %v1399_v56 = vadd.f32 %v1398_v2, %v1332_v12 }
 0x5eb   : > { %1762 = shalt.err (!%p1759_p2)
}
 0x5ec   : > { %s1763_s22 = scalar_lea.hbm %s2537_s30, 256  ;;  %s1767_s3 = scalar_lea.hbm %s2636_s13, 512 }
 0x5ed   : > { %p1764_p3 = scmp.ne.s32.totalorder %s2537_s30, %s1763_s22  ;;  %p1768_p8 = scmp.lt.s32.totalorder %s2537_s30, %s2636_s13 }
 0x5ee   : > { %p1769_p11 = scmp.lt.s32.totalorder %s1767_s3, %s1763_s22 }
 0x5ef   : > { %p1765_p4 = pnand %p1764_p3, %p1963_p5 }
 0x5f0   : > { %p1770_p9 = por %p1769_p11, %p1768_p8 }
 0x5f1   : > { %p1766_p7 = pneg %p1765_p4 }
 0x5f3   : > { %p1771_p10 = pnand %p1770_p9, %p1766_p7 }
 0x5f5   : > { %1774 = shalt.err (!%p1771_p10)
}
 0x5f6   : > { %s1852_s16 = smov 128   ;;  %s1853_s2 = smov 8   ;;  %v1733_v25 = vld [vmem:[%s2008_s11 + $0x8] sm:$0xff] }
 0x5f7   : > { %s2654_s15 = scalar_lea.sflag [#allocation7], %s2525_s21  ;;  %s2655_s0 = sshll.u32 %s2539_s20, 4  ;;  %v1411_v5 = vadd.f32 %v1733_v25, %v1399_v56  ;;  %s2571_s0 = int_to_ptr.vmem [resolvable:$true] %s2655_s0 }
 0x5f8   : > { %1641 = dma.vmem_to_hbm [thread:$0]  (%p1963_p5), %s2529_s17, 256, %s2537_s30, %s2654_s15, %s1852_s16, %s1852_s16, %s1853_s2  }
 0x5f9   : > { %s2656_s23 = sshll.u32 %s1946_s29, 8  ;;  %1413 = vst [vmem:[%s2539_s20 + $0x8] sm:$0xff] %v1411_v5  ;;  %s1417_s3 = scalar_lea.sflag [#allocation3], %s2525_s21 }
 0x5fa   : > { %s2579_s1 = scalar_lea.hbm %s2635_s12, %s2656_s23  ;;  %s1775_s4 = scalar_lea.vmem %s2571_s0, 256 }
 0x5fb   : > { %p1776_p12 = scmp.ne.s32.totalorder %s2571_s0, %s1775_s4  ;;  %s1854_s17 = smov [#allocation5]  }
 0x5fc   : > { %s1779_s30 = sshll.u32 %s1854_s17, 4  ;;  %s1780_s30 = int_to_ptr.vmem [resolvable:$false] %s1779_s30 }
 0x5fd   : > { %p1777_p13 = pnand %p1776_p12, %p1963_p5  ;;  %s1781_s15 = scalar_lea.vmem %s1780_s30, 512 }
 0x5fe   : > { %p1782_p1 = scmp.lt.s32.totalorder %s2571_s0, %s1780_s30  ;;  %p1783_p2 = scmp.lt.s32.totalorder %s1781_s15, %s1775_s4 }
 0x5ff   : > { %p1778_p0 = pneg %p1777_p13 }
 0x600   : > { %p1784_p3 = por %p1783_p2, %p1782_p1 }
 0x602   : > { %p1785_p4 = pnand %p1784_p3, %p1778_p0 }
 0x604   : > { %1788 = shalt.err (!%p1785_p4)
}
 0x605   : > { %s1789_s11 = scalar_lea.hbm %s2579_s1, 256  ;;  %s1793_s20 = scalar_lea.hbm %s2635_s12, 512 }
 0x606   : > { %p1790_p7 = scmp.ne.s32.totalorder %s2579_s1, %s1789_s11  ;;  %p1794_p9 = scmp.lt.s32.totalorder %s2579_s1, %s2635_s12 }
 0x607   : > { %p1795_p10 = scmp.lt.s32.totalorder %s1793_s20, %s1789_s11 }
 0x608   : > { %p1791_p8 = pnand %p1790_p7, %p1963_p5 }
 0x609   : > { %p1796_p12 = por %p1795_p10, %p1794_p9 }
 0x60a   : > { %p1792_p11 = pneg %p1791_p8 }
 0x60c   : > { %p1797_p13 = pnand %p1796_p12, %p1792_p11 }
 0x60e   : > { %1800 = shalt.err (!%p1797_p13)
}
 0x60f   : > { %1640 = dma.vmem_to_hbm [thread:$0]  (%p1963_p5), %s2571_s0, 256, %s2579_s1, %s1417_s3, %s1852_s16, %s1852_s16, %s1853_s2  }
 0x610 PF: > { %p1657_p0 = scmp.ge.s32.totalorder %s1843_s28, 2  ;;  %s1466_s4 = sand.u32 1, %s1831_s25  }
 0x611   : > { %s1467_s22 = scalar_lea.sflag [#allocation3], %s1466_s4 }
 0x612   : > { %p1649_p1 = pnand %p1657_p0, %p1967_p6 }
 0x614   : > { %p1650_p2 = pneg %p1649_p1 }
 0x616   : > { %1822 = dma.done.wait (%p1650_p2), %s1467_s22, 256  }
 0x617   : > { %1824 = vsyncadd (%p1650_p2), %s1467_s22, 4294967040  ;;  %s1476_s17 = scalar_lea.sflag [#allocation7], %s1466_s4 }
 0x618   : > { %1826 = dma.done.wait (%p1650_p2), %s1476_s17, 256  }
 0x619   : > { %1828 = vsyncadd (%p1650_p2), %s1476_s17, 4294967040  ;;  %s2657_s18 = sld [smem:[#allocation11_spill]]  ;;  %p28_p5 = scmp.ge.s32.totalorder %s1950_s14, 4  }
 0x61a   : > { %s2658_s25 = smov %s1835_s26  ;;  %s2659_s26 = smov %s1839_s27 }
 0x61b   : > { %s2661_s28 = smov %s1950_s14  ;;  %30 = sbr.rel (!%p28_p5) target bundleno = 13 (0xd), region = 125 }
 0x61f   : > { %s2660_s27 = smov %s2657_s18 }
 0x620   :  { %1481 = vsyncpa [#allocation3], 1 }
 0x621   :  { %1483 = vsyncpa [#allocation3 + $0x1], 1 }
 0x622   :  { %1484 = vsyncpa [#allocation7], 1 }
 0x623   :  { %1486 = vsyncpa [#allocation7 + $0x1], 1 }
 0x624   :  { %1487 = vsyncpa [#allocation4], 1 }
 0x625   :  { %1489 = vsyncpa [#allocation4 + $0x1], 1 }

</bundles_post_ra>
